<compile_context>
chip_gen: v7x
topology: tpu7x:2x2x1
jax: 0.10.0
libtpu: 0.0.40
codegen_flags: <defaults>
</compile_context>

<pallas_src>
import functools
import math

import jax
import jax.numpy as jnp
import numpy as np
from jax import lax
from jax.experimental import pallas as pl
from jax.experimental.pallas import tpu as pltpu

LEAKY_SLOPE = 0.2
BN_EPS = 1e-5
MAX_TILE_ROWS = 1024     # hard cap on the output-row tile (MXU M dimension)
PER_TAP_MIN_W = 128      # min folded width per group for per-tap accumulation


def _round_up(x, m):
    return -(-x // m) * m


def _round_down(x, m):
    return (x // m) * m


# --------------------------------------------------------------------------
# Capability probes (run once, eagerly, outside jit) + VMEM budget
# --------------------------------------------------------------------------
def _element_probe_case(dtype, lanes, step):
    """Overlapping-window input via pl.Element; result is verified numerically."""
    halo = step
    tiles = 2
    used = tiles * step + halo
    # Big enough that even a misinterpreted index map stays in bounds.
    rows = step * (step + halo) + used
    base = jnp.arange(rows, dtype=jnp.float32) % 97.0
    x = jnp.broadcast_to(base[None, :, None], (2, rows, lanes)).astype(dtype)

    def kernel(x_ref, o_ref):
        o_ref[...] = x_ref[0:step, :] + x_ref[halo:halo + step, :]

    y = pl.pallas_call(
        kernel,
        out_shape=jax.ShapeDtypeStruct((2, tiles * step, lanes), dtype),
        grid=(2, tiles),
        in_specs=[pl.BlockSpec((None, pl.Element(step + halo), lanes),
                               lambda b, j: (b, j * step, 0))],
        out_specs=pl.BlockSpec((None, step, lanes), lambda b, j: (b, j, 0)),
    )(x)
    ref = np.arange(rows, dtype=np.float32) % 97.0
    exp = ref[:tiles * step] + ref[halo:halo + tiles * step]
    exp = np.broadcast_to(exp[None, :, None], (2, tiles * step, lanes))
    return bool(np.allclose(np.asarray(y, np.float32), exp, rtol=1e-3, atol=1e-3))


@functools.cache
def _element_overlap_ok():
    """True if overlapping pl.Element input windows lower & run correctly."""
    try:
        return all(_element_probe_case(dt, lanes, step) for dt, lanes, step in
                   ((jnp.bfloat16, 16, 16),
                    (jnp.bfloat16, 2, 16),
                    (jnp.float32, 128, 8)))
    except Exception:
        return False


@functools.cache
def _single_buffer_weights_ok():
    """True if pipeline_mode=pl.Buffered(1) works for grid-invariant inputs."""
    def kernel(x_ref, w_ref, o_ref):
        o_ref[...] = jnp.dot(x_ref[...], w_ref[...],
                             preferred_element_type=jnp.float32)

    try:
        x = jnp.full((64, 128), 0.5, jnp.bfloat16)
        w = jnp.full((128, 128), 0.25, jnp.bfloat16)
        y = pl.pallas_call(
            kernel,
            out_shape=jax.ShapeDtypeStruct((64, 128), jnp.float32),
            grid=(4,),
            in_specs=[pl.BlockSpec((16, 128), lambda i: (i, 0)),
                      pl.BlockSpec((128, 128), lambda i: (0, 0),
                                   pipeline_mode=pl.Buffered(1))],
            out_specs=pl.BlockSpec((16, 128), lambda i: (i, 0)),
        )(x, w)
        return bool(np.allclose(np.asarray(y), 16.0, rtol=1e-3))
    except Exception:
        return False


@functools.cache
def _vmem_limit_bytes():
    """Per-generation scoped-VMEM limit (v5e/v6e -> 64 MiB, v7x -> ~32 MiB)."""
    cap = 64 * 1024 * 1024  # conservative default if the query fails
    try:
        info = pltpu.get_tpu_info()
        cap = int(getattr(info, "vmem_capacity_bytes", cap)) or cap
    except Exception:
        pass
    return int(min(64 * 1024 * 1024, max(32 * 1024 * 1024, cap // 2)))


def _select_tile(*, l_out, w_row, cout, n_taps, halo, act_bytes, out_bytes,
                 w_bytes, per_tap, use_overlap, single_buffer_weights,
                 vmem_limit, tile_cap):
    """Largest output-row tile whose working set fits the VMEM budget."""
    unit = int(np.lcm(16, halo))
    cap = MAX_TILE_ROWS if tile_cap is None else tile_cap
    cap = max(unit, _round_down(cap, unit))

    fixed = w_bytes * (1 if single_buffer_weights else 2)  # resident weights
    fixed += 2 * halo * w_row * act_bytes                  # halo rows of the input block(s)
    fixed += 4 * 1024 * 1024                               # margin: temps + compiler scratch

    per_row = 2 * w_row * act_bytes                        # double-buffered input rows
    if not use_overlap:
        per_row += w_row * act_bytes                       # staging scratch (fallback path)
    per_row += 2 * cout * out_bytes                        # double-buffered output rows
    per_row += cout * 4                                    # f32 accumulator / epilogue
    if not per_tap:
        per_row += n_taps * w_row * act_bytes              # concatenated im2col temporary

    budget = max(vmem_limit - fixed, unit * per_row)
    tile = _round_down(budget // per_row, unit)
    tile = max(unit, min(tile, cap, _round_up(l_out, unit)))
    return int(tile)


# --------------------------------------------------------------------------
# Pallas kernels: one fused unit = Conv1d (+BN epilogue) (+LeakyReLU)
# --------------------------------------------------------------------------
def _unit_compute(x_ref, w_ref, scale_ref, b_ref, o_ref, *, tile, n_taps,
                  groups, per_tap, use_act):
    w_grp = x_ref.shape[-1] // groups
    coutg = o_ref.shape[-1] // groups
    for g in range(groups):
        lo = g * w_grp
        if per_tap:
            # n_taps partial MXU matmuls accumulated in f32 -- no lane concat.
            acc = None
            for q in range(n_taps):
                part = jnp.dot(x_ref[q:q + tile, lo:lo + w_grp], w_ref[g, q],
                               preferred_element_type=jnp.float32)
                acc = part if acc is None else acc + part
        else:
            # Narrow folded width: stack taps on lanes so the MXU contraction
            # is n_taps * (W/groups).
            if n_taps == 1:
                xim = x_ref[0:tile, lo:lo + w_grp]
            else:
                xim = jnp.concatenate(
                    [x_ref[q:q + tile, lo:lo + w_grp] for q in range(n_taps)],
                    axis=1)
            acc = jnp.dot(xim, w_ref[g], preferred_element_type=jnp.float32)
        co = g * coutg
        y = acc * scale_ref[:, co:co + coutg] + b_ref[:, co:co + coutg]
        if use_act:
            y = jnp.maximum(y, LEAKY_SLOPE * y)            # LeakyReLU(0.2)
        o_ref[:, co:co + coutg] = y.astype(o_ref.dtype)    # per-group store


def _unit_kernel_overlap(x_ref, w_ref, scale_ref, b_ref, o_ref, **kw):
    # x_ref: (tile + halo, W) overlapping window delivered by pl.Element ->
    # taps are sliced directly from the input block, no staging copy.
    _unit_compute(x_ref, w_ref, scale_ref, b_ref, o_ref, **kw)


def _unit_kernel_halo(xb_ref, xh_ref, w_ref, scale_ref, b_ref, o_ref, xpad_ref,
                      *, tile, **kw):
    # Fallback (no pl.Element support): stitch body + halo into VMEM scratch
    # so every tap is a contiguous sublane slice.
    xpad_ref[0:tile, :] = xb_ref[...]
    xpad_ref[tile:, :] = xh_ref[...]
    _unit_compute(xpad_ref, w_ref, scale_ref, b_ref, o_ref, tile=tile, **kw)


def conv_unit_pallas(x_nlc, w_packed, scale, bias, *, ksize, stride, pad,
                     groups, per_tap, use_act, out_dtype, halo, tile_cap,
                     vmem_limit, use_overlap, single_buffer_weights):
    """One fused encoder unit on (N, L, Cin) activations."""
    n, length, cin = x_nlc.shape
    act_dtype = x_nlc.dtype
    w_row = stride * cin                        # folded (polyphase) row width
    cout = int(bias.shape[-1])
    n_taps = (ksize - 1) // stride + 1
    l_out = (length + 2 * pad - ksize) // stride + 1
    assert halo >= n_taps - 1, (halo, n_taps)

    tile = _select_tile(
        l_out=l_out, w_row=w_row, cout=cout, n_taps=n_taps, halo=halo,
        act_bytes=np.dtype(act_dtype).itemsize,
        out_bytes=np.dtype(out_dtype).itemsize,
        w_bytes=int(math.prod(w_packed.shape)) * np.dtype(w_packed.dtype).itemsize,
        per_tap=per_tap, use_overlap=use_overlap,
        single_buffer_weights=single_buffer_weights,
        vmem_limit=vmem_limit, tile_cap=tile_cap)
    n_tiles = pl.cdiv(l_out, tile)   # ragged last tile masked by Pallas

    # Zero-pad (single fused XLA op) then polyphase-fold by `stride` (a free
    # row-major reshape): (N, L_pad, Cin) -> (N, F, stride*Cin).  F covers the
    # ragged round-up plus the last tile's halo, so all kernel reads are in
    # bounds; the extra zero rows are masked by the zero taps of the packed
    # weight (q*stride + p >= ksize).
    f_rows = n_tiles * tile + halo
    pad_right = f_rows * stride - length - pad
    assert pad_right >= 0, (f_rows, stride, length, pad)
    x_f = jnp.pad(x_nlc, ((0, 0), (pad, pad_right), (0, 0))).reshape(
        n, f_rows, w_row)
    # TODO(synk): write this padding from the producing kernel instead of a
    # separate jnp.pad (extra HBM pass per layer).

    kern_kw = dict(tile=tile, n_taps=n_taps, groups=groups, per_tap=per_tap,
                   use_act=use_act)
    nd = w_packed.ndim
    w_index_map = lambda b, j: (0,) * nd
    wspec_kw = dict(pipeline_mode=pl.Buffered(1)) if single_buffer_weights else {}
    w_spec = pl.BlockSpec(w_packed.shape, w_index_map, **wspec_kw)
    vec_specs = [pl.BlockSpec((1, cout), lambda b, j: (0, 0)) for _ in range(2)]
    out_spec = pl.BlockSpec((None, tile, cout), lambda b, j: (b, j, 0))
    out_shape = jax.ShapeDtypeStruct((n, l_out, cout), out_dtype)
    cparams = pltpu.CompilerParams(
        dimension_semantics=("parallel", "parallel"),
        vmem_limit_bytes=vmem_limit)

    if use_overlap:
        # One overlapping (tile + halo, W) window per grid step, element-
        # indexed: no duplicate body/halo streams and no staging copy.
        return pl.pallas_call(
            functools.partial(_unit_kernel_overlap, **kern_kw),
            out_shape=out_shape,
            grid=(n, n_tiles),
            in_specs=[pl.BlockSpec((None, pl.Element(tile + halo), w_row),
                                   lambda b, j: (b, j * tile, 0)),
                      w_spec, *vec_specs],
            out_specs=out_spec,
            compiler_params=cparams,
        )(x_f, w_packed, scale, bias)

    # Fallback: body + halo BlockSpecs on the same array + VMEM staging.
    assert tile % halo == 0, (tile, halo)
    tph = tile // halo
    return pl.pallas_call(
        functools.partial(_unit_kernel_halo, **kern_kw),
        out_shape=out_shape,
        grid=(n, n_tiles),
        in_specs=[pl.BlockSpec((None, tile, w_row), lambda b, j: (b, j, 0)),
                  pl.BlockSpec((None, halo, w_row),
                               lambda b, j: (b, (j + 1) * tph, 0)),
                  w_spec, *vec_specs],
        out_specs=out_spec,
        scratch_shapes=[pltpu.VMEM((tile + halo, w_row), act_dtype)],
        compiler_params=cparams,
    )(x_f, x_f, w_packed, scale, bias)


# --------------------------------------------------------------------------
# Host-side parameter prep (done once per model, outside the forward path)
# --------------------------------------------------------------------------
def _prep_unit_params(unit, act_dtype, per_tap_min_w=PER_TAP_MIN_W):
    """Tap-stacked (im2col) weight + f32 epilogue (scale, bias).

    The BatchNorm that follows the conv is applied as a per-channel f32
    epilogue instead of being folded into the (bf16) weights, so small
    running-variance BN stats do not lose precision.
    """
    w_pt = jnp.asarray(unit["w"], jnp.float32)          # (Cout, Cin/g, K)
    b = jnp.asarray(unit["b"], jnp.float32)
    stride, groups = int(unit["stride"]), int(unit["groups"])
    cout, cin_g, ksize = w_pt.shape
    cin = cin_g * groups
    n_taps = (ksize - 1) // stride + 1
    w_grp = stride * cin // groups
    per_tap = w_grp >= per_tap_min_w
    coutg = cout // groups

    if unit["post_bn"] is not None:                     # y = scale*(conv+b)+shift
        gamma, beta, mean, var = unit["post_bn"]
        scale = gamma * lax.rsqrt(var + BN_EPS)
        shift = beta - mean * scale
    else:
        scale = jnp.ones((cout,), jnp.float32)
        shift = jnp.zeros((cout,), jnp.float32)
    bias = b * scale + shift

    if groups == 1:
        # folded lane index = p*Cin + c at tap q; taps with q*stride+p >= K
        # stay zero (this masks the extra zero rows on the right).
        w_k = jnp.transpose(w_pt, (2, 1, 0))            # (K, Cin, Cout)
        w_taps = jnp.zeros((n_taps, stride, cin, cout), jnp.float32)
        for k in range(ksize):
            q, p = divmod(k, stride)
            w_taps = w_taps.at[q, p].set(w_k[k])
        w_packed = w_taps.reshape(1, n_taps, stride * cin, cout)
    else:
        assert stride == 1, "grouped strided conv not used by RaveEncoder"
        pieces = [jnp.transpose(w_pt[g * coutg:(g + 1) * coutg], (2, 1, 0))
                  for g in range(groups)]               # each (K, Cin_g, CoutG)
        w_packed = jnp.stack(pieces, axis=0)            # (G, K, Cin_g, CoutG)

    if not per_tap:                                     # concat-im2col layout
        w_packed = w_packed.reshape(groups, n_taps * w_grp, coutg)
    return (w_packed.astype(act_dtype), scale.reshape(1, cout),
            bias.reshape(1, cout), per_tap, n_taps)


def build_rave_encoder(units, *, act_dtype=jnp.bfloat16, tile_cap=None,
                       per_tap_min_w=PER_TAP_MIN_W):
    """Pre-packs all parameters once and returns a jitted NCL->NCL forward."""
    use_overlap = _element_overlap_ok()
    single_buffer_weights = _single_buffer_weights_ok()
    vmem_limit = _vmem_limit_bytes()
    sublane = 16 if np.dtype(act_dtype).itemsize < 4 else 8

    metas, params = [], []
    for i, u in enumerate(units):
        w_packed, scale, bias, per_tap, n_taps = _prep_unit_params(
            u, act_dtype, per_tap_min_w)
        halo = _round_up(max(n_taps - 1, 1), sublane)
        last = i == len(units) - 1
        metas.append(dict(
            ksize=int(u["w"].shape[2]), stride=int(u["stride"]),
            pad=int(u["pad"]), groups=int(u["groups"]), per_tap=per_tap,
            use_act=bool(u["post_act"]),
            out_dtype=jnp.float32 if last else act_dtype,
            halo=halo, tile_cap=tile_cap, vmem_limit=vmem_limit,
            use_overlap=use_overlap,
            single_buffer_weights=single_buffer_weights))
        params.append((w_packed, scale, bias))
    params = tuple(params)

    def forward(x_ncl, layer_params):
        x = jnp.transpose(x_ncl, (0, 2, 1)).astype(act_dtype)   # NCL -> NLC
        for meta, (w, s, b) in zip(metas, layer_params):
            x = conv_unit_pallas(x, w, s, b, **meta)
        return jnp.transpose(x, (0, 2, 1))                      # NLC -> NCL

    jitted = jax.jit(forward)
    return lambda x_ncl: jitted(x_ncl, params)


# --------------------------------------------------------------------------
# Parameter construction (deterministic, synthetic), grouped as fused units
# --------------------------------------------------------------------------
def init_rave_encoder_params(key, data_size, capacity, latent_size, ratios):
    def conv_init(k, cin_g, cout, ks):
        kw, kb = jax.random.split(k)
        std = 1.0 / np.sqrt(cin_g * ks)
        w = jax.random.normal(kw, (cout, cin_g, ks), jnp.float32) * std
        b = jax.random.uniform(kb, (cout,), jnp.float32, -std, std)
        return w, b

    def bn_init(k, c):
        k1, k2, k3, k4 = jax.random.split(k, 4)
        gamma = 1.0 + 0.1 * jax.random.normal(k1, (c,), jnp.float32)
        beta = 0.1 * jax.random.normal(k2, (c,), jnp.float32)
        mean = 0.1 * jax.random.normal(k3, (c,), jnp.float32)
        var = jax.random.uniform(k4, (c,), jnp.float32, 0.5, 1.5)
        return (gamma, beta, mean, var)

    keys = iter(jax.random.split(key, 2 * len(ratios) + 8))
    units = []

    # Conv(data_size -> capacity, k=7, pad=3), followed by BN(cap)+LeakyReLU
    w, b = conv_init(next(keys), data_size, capacity, 7)
    units.append(dict(w=w, b=b, stride=1, pad=3, groups=1,
                      post_bn=bn_init(next(keys), capacity), post_act=True))

    in_dim = capacity
    for i, r in enumerate(ratios):
        out_dim = 2 ** (i + 1) * capacity
        ks = 2 * r + 1
        w, b = conv_init(next(keys), in_dim, out_dim, ks)
        post_bn = bn_init(next(keys), out_dim) if i < len(ratios) - 1 else None
        units.append(dict(w=w, b=b, stride=r, pad=ks // 2, groups=1,
                          post_bn=post_bn, post_act=True))
        in_dim = out_dim

    # final Conv(out_dim -> latent_size, k=5, pad=2, groups=2), no epilogue
    w, b = conv_init(next(keys), in_dim // 2, latent_size, 5)
    units.append(dict(w=w, b=b, stride=1, pad=2, groups=2,
                      post_bn=None, post_act=False))
    return units


# --------------------------------------------------------------------------
# Pure-JAX reference
# --------------------------------------------------------------------------
def rave_encoder_ref(x_ncl, units):
    x = x_ncl.astype(jnp.float32)
    for u in units:
        x = lax.conv_general_dilated(
            x, u["w"], window_strides=(u["stride"],),
            padding=[(u["pad"], u["pad"])],
            dimension_numbers=("NCH", "OIH", "NCH"),
            feature_group_count=u["groups"],
            precision=lax.Precision.HIGHEST)
        x = x + u["b"][None, :, None]
        if u["post_bn"] is not None:
            gamma, beta, mean, var = u["post_bn"]
            s = gamma * lax.rsqrt(var + BN_EPS)
            x = (x - mean[None, :, None]) * s[None, :, None] + beta[None, :, None]
        if u["post_act"]:
            x = jnp.where(x >= 0, x, LEAKY_SLOPE * x)
    return x


if __name__ == "__main__":
    key = jax.random.PRNGKey(0)
    kp, kx1, kx2 = jax.random.split(key, 3)

    data_size, capacity, latent_size = 2, 8, 8
    ratios = [2, 2]
    batch = 2

    units = init_rave_encoder_params(kp, data_size, capacity, latent_size,
                                     ratios)

    # Config A: f32 activations, tiny tiles -> multi-tile halo path + concat
    # im2col, exactly-divisible lengths.
    x_a = jax.random.normal(kx1, (batch, data_size, 64), jnp.float32)  # NCL
    ref_a = jax.block_until_ready(rave_encoder_ref(x_a, units))
    enc_a = build_rave_encoder(units, act_dtype=jnp.float32, tile_cap=16)
    y_a = jax.block_until_ready(enc_a(x_a))
    assert y_a.shape == (batch, latent_size, 16), y_a.shape
    np.testing.assert_allclose(np.asarray(y_a), np.asarray(ref_a),
                               rtol=2e-2, atol=2e-2)

    # Config B: f32, awkward length (72) -> ragged last tiles, plus the
    # per-tap accumulation path (forced) and the grouped final conv.
    x_b = jax.random.normal(kx2, (batch, data_size, 72), jnp.float32)  # NCL
    ref_b = jax.block_until_ready(rave_encoder_ref(x_b, units))
    enc_b = build_rave_encoder(units, act_dtype=jnp.float32, tile_cap=32,
                               per_tap_min_w=8)
    y_b = jax.block_until_ready(enc_b(x_b))
    assert y_b.shape == (batch, latent_size, 18), y_b.shape
    np.testing.assert_allclose(np.asarray(y_b), np.asarray(ref_b),
                               rtol=2e-2, atol=2e-2)

    # Config C: bf16 activations, default (VMEM-budgeted) tiles -- the
    # production-style setting.
    enc_c = build_rave_encoder(units)
    y_c = jax.block_until_ready(enc_c(x_a))
    assert y_c.shape == (batch, latent_size, 16), y_c.shape
    np.testing.assert_allclose(np.asarray(y_c), np.asarray(ref_a),
                               rtol=1e-1, atol=1e-1)

    print("KERNEL_OK")
</pallas_src>

<mosaic_0001>
module attributes {stable_mosaic.version = 11 : i64} {
  func.func @kernel(%arg0: i32, %arg1: memref<16x128xbf16, #tpu.memory_space<vmem>>, %arg2: memref<128x128xbf16, #tpu.memory_space<vmem>>, %arg3: memref<16x128xf32, #tpu.memory_space<vmem>>) attributes {dimension_semantics = [#tpu.dimension_semantics<arbitrary>], iteration_bounds = array<i64: 4>, scalar_prefetch = 0 : i64, scratch_operands = 0 : i64, tpu.core_type = #tpu.core_type<tc>, window_params = [{transform_indices = @transform_0, window_bounds = array<i64: 16, 128>}, {pipeline_mode = #tpu.pipeline_mode<synchronous>, transform_indices = @transform_1, window_bounds = array<i64: 128, 128>}, {transform_indices = @transform_2, window_bounds = array<i64: 16, 128>}]} {
    %c0 = arith.constant 0 : index
    %c0_0 = arith.constant 0 : index
    %0 = vector.load %arg1[%c0, %c0_0] : memref<16x128xbf16, #tpu.memory_space<vmem>>, vector<16x128xbf16>
    %c0_1 = arith.constant 0 : index
    %c0_2 = arith.constant 0 : index
    %1 = vector.load %arg2[%c0_1, %c0_2] : memref<128x128xbf16, #tpu.memory_space<vmem>>, vector<128x128xbf16>
    %cst = arith.constant dense<0.000000e+00> : vector<16x128xf32>
    %2 = tpu.matmul %0, %1, %cst {dimension_numbers = #tpu.dot_dimension_numbers<[1], [0], [0], [1], [0, 0, 1, 1], [], []>} : vector<16x128xbf16>, vector<128x128xbf16>, vector<16x128xf32> -> vector<16x128xf32>
    %c0_3 = arith.constant 0 : index
    %c0_4 = arith.constant 0 : index
    %3 = vector.load %arg3[%c0_3, %c0_4] : memref<16x128xf32, #tpu.memory_space<vmem>>, vector<16x128xf32>
    tpu.vector_store %arg3[%c0_3, %c0_4], %2 {strides = array<i32>} : memref<16x128xf32, #tpu.memory_space<vmem>>, vector<16x128xf32>,
    return
  }
  func.func @transform_0(%arg0: i32) -> (i32, i32) {
    %c0_i32 = arith.constant 0 : i32
    %c0_i32_0 = arith.constant 0 : i32
    return %arg0, %c0_i32 : i32, i32
  }
  func.func @transform_1(%arg0: i32) -> (i32, i32) {
    %c0_i32 = arith.constant 0 : i32
    %c0_i32_0 = arith.constant 0 : i32
    %c0_i32_1 = arith.constant 0 : i32
    return %c0_i32, %c0_i32_0 : i32, i32
  }
  func.func @transform_2(%arg0: i32) -> (i32, i32) {
    %c0_i32 = arith.constant 0 : i32
    %c0_i32_0 = arith.constant 0 : i32
    return %arg0, %c0_i32 : i32, i32
  }
}

module attributes {stable_mosaic.version = 11 : i64} {
  func.func @_unit_kernel_halo(%arg0: i32, %arg1: i32, %arg2: memref<1x16x32xf32, #tpu.memory_space<vmem>>, %arg3: memref<1x8x32xf32, #tpu.memory_space<vmem>>, %arg4: memref<1x96x32xf32, #tpu.memory_space<vmem>>, %arg5: memref<1x32xf32, #tpu.memory_space<vmem>>, %arg6: memref<1x32xf32, #tpu.memory_space<vmem>>, %arg7: memref<1x16x32xf32, #tpu.memory_space<vmem>>, %arg8: memref<24x32xf32, #tpu.memory_space<vmem>>) attributes {dimension_semantics = [#tpu.dimension_semantics<parallel>, #tpu.dimension_semantics<parallel>], iteration_bounds = array<i64: 2, 1>, scalar_prefetch = 0 : i64, scratch_operands = 1 : i64, tpu.core_type = #tpu.core_type<tc>, window_params = [{transform_indices = @transform_0, window_bounds = array<i64: 1, 16, 32>}, {transform_indices = @transform_1, window_bounds = array<i64: 1, 8, 32>}, {pipeline_mode = #tpu.pipeline_mode<synchronous>, transform_indices = @transform_2, window_bounds = array<i64: 1, 96, 32>}, {pipeline_mode = #tpu.pipeline_mode<synchronous>, transform_indices = @transform_3, window_bounds = array<i64: 1, 32>}, {pipeline_mode = #tpu.pipeline_mode<synchronous>, transform_indices = @transform_4, window_bounds = array<i64: 1, 32>}, {transform_indices = @transform_5, window_bounds = array<i64: 1, 16, 32>}]} {
    %c0 = arith.constant 0 : index
    %c0_0 = arith.constant 0 : index
    %c0_1 = arith.constant 0 : index
    %0 = vector.load %arg2[%c0, %c0_0, %c0_1] : memref<1x16x32xf32, #tpu.memory_space<vmem>>, vector<1x16x32xf32>
    %1 = vector.shape_cast %0 : vector<1x16x32xf32> to vector<16x32xf32>
    %c0_2 = arith.constant 0 : index
    %c0_3 = arith.constant 0 : index
    %2 = vector.load %arg8[%c0_2, %c0_3] : memref<24x32xf32, #tpu.memory_space<vmem>>, vector<16x32xf32>
    tpu.vector_store %arg8[%c0_2, %c0_3], %1 {strides = array<i32>} : memref<24x32xf32, #tpu.memory_space<vmem>>, vector<16x32xf32>,
    %c0_4 = arith.constant 0 : index
    %c0_5 = arith.constant 0 : index
    %c0_6 = arith.constant 0 : index
    %3 = vector.load %arg3[%c0_4, %c0_5, %c0_6] : memref<1x8x32xf32, #tpu.memory_space<vmem>>, vector<1x8x32xf32>
    %4 = vector.shape_cast %3 : vector<1x8x32xf32> to vector<8x32xf32>
    %c16 = arith.constant 16 : index
    %c0_7 = arith.constant 0 : index
    %5 = vector.load %arg8[%c16, %c0_7] : memref<24x32xf32, #tpu.memory_space<vmem>>, vector<8x32xf32>
    tpu.vector_store %arg8[%c16, %c0_7], %4 {strides = array<i32>} : memref<24x32xf32, #tpu.memory_space<vmem>>, vector<8x32xf32>,
    %c0_8 = arith.constant 0 : index
    %c0_9 = arith.constant 0 : index
    %6 = vector.load %arg8[%c0_8, %c0_9] : memref<24x32xf32, #tpu.memory_space<vmem>>, vector<16x32xf32>
    %c1 = arith.constant 1 : index
    %c0_10 = arith.constant 0 : index
    %7 = vector.load %arg8[%c1, %c0_10] : memref<24x32xf32, #tpu.memory_space<vmem>>, vector<16x32xf32>
    %c2 = arith.constant 2 : index
    %c0_11 = arith.constant 0 : index
    %8 = vector.load %arg8[%c2, %c0_11] : memref<24x32xf32, #tpu.memory_space<vmem>>, vector<16x32xf32>
    %9 = tpu.concatenate %6, %7, %8 in 1 : vector<16x32xf32>, vector<16x32xf32>, vector<16x32xf32> -> vector<16x96xf32>
    %c0_12 = arith.constant 0 : index
    %c0_13 = arith.constant 0 : index
    %c0_14 = arith.constant 0 : index
    %10 = vector.load %arg4[%c0_12, %c0_13, %c0_14] : memref<1x96x32xf32, #tpu.memory_space<vmem>>, vector<1x96x32xf32>
    %11 = vector.shape_cast %10 : vector<1x96x32xf32> to vector<96x32xf32>
    %cst = arith.constant dense<0.000000e+00> : vector<16x32xf32>
    %12 = tpu.matmul %9, %11, %cst {dimension_numbers = #tpu.dot_dimension_numbers<[1], [0], [0], [1], [0, 0, 1, 1], [], []>} : vector<16x96xf32>, vector<96x32xf32>, vector<16x32xf32> -> vector<16x32xf32>
    %c0_15 = arith.constant 0 : index
    %c0_16 = arith.constant 0 : index
    %13 = vector.load %arg5[%c0_15, %c0_16] : memref<1x32xf32, #tpu.memory_space<vmem>>, vector<1x32xf32>
    %14 = vector.broadcast %13 : vector<1x32xf32> to vector<16x32xf32>
    %15 = arith.mulf %12, %14 : vector<16x32xf32>
    %c0_17 = arith.constant 0 : index
    %c0_18 = arith.constant 0 : index
    %16 = vector.load %arg6[%c0_17, %c0_18] : memref<1x32xf32, #tpu.memory_space<vmem>>, vector<1x32xf32>
    %17 = vector.broadcast %16 : vector<1x32xf32> to vector<16x32xf32>
    %18 = arith.addf %15, %17 : vector<16x32xf32>
    %cst_19 = arith.constant 2.000000e-01 : f32
    %19 = vector.broadcast %cst_19 : f32 to vector<16x32xf32>
    %20 = arith.mulf %19, %18 : vector<16x32xf32>
    %21 = arith.maximumf %18, %20 : vector<16x32xf32>
    %c0_20 = arith.constant 0 : index
    %c0_21 = arith.constant 0 : index
    %c0_22 = arith.constant 0 : index
    %22 = vector.load %arg7[%c0_20, %c0_21, %c0_22] : memref<1x16x32xf32, #tpu.memory_space<vmem>>, vector<1x16x32xf32>
    %23 = vector.shape_cast %22 : vector<1x16x32xf32> to vector<16x32xf32>
    %24 = vector.shape_cast %21 : vector<16x32xf32> to vector<1x16x32xf32>
    tpu.vector_store %arg7[%c0_20, %c0_21, %c0_22], %24 {strides = array<i32>} : memref<1x16x32xf32, #tpu.memory_space<vmem>>, vector<1x16x32xf32>,
    return
  }
  func.func @transform_0(%arg0: i32, %arg1: i32) -> (i32, i32, i32) {
    %c0_i32 = arith.constant 0 : i32
    %c0_i32_0 = arith.constant 0 : i32
    return %arg0, %arg1, %c0_i32 : i32, i32, i32
  }
  func.func @transform_1(%arg0: i32, %arg1: i32) -> (i32, i32, i32) {
    %c1_i32 = arith.constant 1 : i32
    %0 = arith.addi %arg1, %c1_i32 : i32
    %c2_i32 = arith.constant 2 : i32
    %1 = arith.muli %0, %c2_i32 : i32
    %c0_i32 = arith.constant 0 : i32
    %c0_i32_0 = arith.constant 0 : i32
    return %arg0, %1, %c0_i32 : i32, i32, i32
  }
  func.func @transform_2(%arg0: i32, %arg1: i32) -> (i32, i32, i32) {
    %c0_i32 = arith.constant 0 : i32
    %c0_i32_0 = arith.constant 0 : i32
    %c0_i32_1 = arith.constant 0 : i32
    %c0_i32_2 = arith.constant 0 : i32
    return %c0_i32, %c0_i32_0, %c0_i32_1 : i32, i32, i32
  }
  func.func @transform_3(%arg0: i32, %arg1: i32) -> (i32, i32) {
    %c0_i32 = arith.constant 0 : i32
    %c0_i32_0 = arith.constant 0 : i32
    %c0_i32_1 = arith.constant 0 : i32
    return %c0_i32, %c0_i32_0 : i32, i32
  }
  func.func @transform_4(%arg0: i32, %arg1: i32) -> (i32, i32) {
    %c0_i32 = arith.constant 0 : i32
    %c0_i32_0 = arith.constant 0 : i32
    %c0_i32_1 = arith.constant 0 : i32
    return %c0_i32, %c0_i32_0 : i32, i32
  }
  func.func @transform_5(%arg0: i32, %arg1: i32) -> (i32, i32, i32) {
    %c0_i32 = arith.constant 0 : i32
    %c0_i32_0 = arith.constant 0 : i32
    return %arg0, %arg1, %c0_i32 : i32, i32, i32
  }
}

module attributes {stable_mosaic.version = 11 : i64} {
  func.func @_unit_kernel_halo(%arg0: i32, %arg1: i32, %arg2: memref<1x16x2xf32, #tpu.memory_space<vmem>>, %arg3: memref<1x8x2xf32, #tpu.memory_space<vmem>>, %arg4: memref<1x14x8xf32, #tpu.memory_space<vmem>>, %arg5: memref<1x8xf32, #tpu.memory_space<vmem>>, %arg6: memref<1x8xf32, #tpu.memory_space<vmem>>, %arg7: memref<1x16x8xf32, #tpu.memory_space<vmem>>, %arg8: memref<24x2xf32, #tpu.memory_space<vmem>>) attributes {dimension_semantics = [#tpu.dimension_semantics<parallel>, #tpu.dimension_semantics<parallel>], iteration_bounds = array<i64: 2, 4>, scalar_prefetch = 0 : i64, scratch_operands = 1 : i64, tpu.core_type = #tpu.core_type<tc>, window_params = [{transform_indices = @transform_0, window_bounds = array<i64: 1, 16, 2>}, {transform_indices = @transform_1, window_bounds = array<i64: 1, 8, 2>}, {pipeline_mode = #tpu.pipeline_mode<synchronous>, transform_indices = @transform_2, window_bounds = array<i64: 1, 14, 8>}, {pipeline_mode = #tpu.pipeline_mode<synchronous>, transform_indices = @transform_3, window_bounds = array<i64: 1, 8>}, {pipeline_mode = #tpu.pipeline_mode<synchronous>, transform_indices = @transform_4, window_bounds = array<i64: 1, 8>}, {transform_indices = @transform_5, window_bounds = array<i64: 1, 16, 8>}]} {
    %c0 = arith.constant 0 : index
    %c0_0 = arith.constant 0 : index
    %c0_1 = arith.constant 0 : index
    %0 = vector.load %arg2[%c0, %c0_0, %c0_1] : memref<1x16x2xf32, #tpu.memory_space<vmem>>, vector<1x16x2xf32>
    %1 = vector.shape_cast %0 : vector<1x16x2xf32> to vector<16x2xf32>
    %c0_2 = arith.constant 0 : index
    %c0_3 = arith.constant 0 : index
    %2 = vector.load %arg8[%c0_2, %c0_3] : memref<24x2xf32, #tpu.memory_space<vmem>>, vector<16x2xf32>
    tpu.vector_store %arg8[%c0_2, %c0_3], %1 {strides = array<i32>} : memref<24x2xf32, #tpu.memory_space<vmem>>, vector<16x2xf32>,
    %c0_4 = arith.constant 0 : index
    %c0_5 = arith.constant 0 : index
    %c0_6 = arith.constant 0 : index
    %3 = vector.load %arg3[%c0_4, %c0_5, %c0_6] : memref<1x8x2xf32, #tpu.memory_space<vmem>>, vector<1x8x2xf32>
    %4 = vector.shape_cast %3 : vector<1x8x2xf32> to vector<8x2xf32>
    %c16 = arith.constant 16 : index
    %c0_7 = arith.constant 0 : index
    %5 = vector.load %arg8[%c16, %c0_7] : memref<24x2xf32, #tpu.memory_space<vmem>>, vector<8x2xf32>
    tpu.vector_store %arg8[%c16, %c0_7], %4 {strides = array<i32>} : memref<24x2xf32, #tpu.memory_space<vmem>>, vector<8x2xf32>,
    %c0_8 = arith.constant 0 : index
    %c0_9 = arith.constant 0 : index
    %6 = vector.load %arg8[%c0_8, %c0_9] : memref<24x2xf32, #tpu.memory_space<vmem>>, vector<16x2xf32>
    %c1 = arith.constant 1 : index
    %c0_10 = arith.constant 0 : index
    %7 = vector.load %arg8[%c1, %c0_10] : memref<24x2xf32, #tpu.memory_space<vmem>>, vector<16x2xf32>
    %c2 = arith.constant 2 : index
    %c0_11 = arith.constant 0 : index
    %8 = vector.load %arg8[%c2, %c0_11] : memref<24x2xf32, #tpu.memory_space<vmem>>, vector<16x2xf32>
    %c3 = arith.constant 3 : index
    %c0_12 = arith.constant 0 : index
    %9 = vector.load %arg8[%c3, %c0_12] : memref<24x2xf32, #tpu.memory_space<vmem>>, vector<16x2xf32>
    %c4 = arith.constant 4 : index
    %c0_13 = arith.constant 0 : index
    %10 = vector.load %arg8[%c4, %c0_13] : memref<24x2xf32, #tpu.memory_space<vmem>>, vector<16x2xf32>
    %c5 = arith.constant 5 : index
    %c0_14 = arith.constant 0 : index
    %11 = vector.load %arg8[%c5, %c0_14] : memref<24x2xf32, #tpu.memory_space<vmem>>, vector<16x2xf32>
    %c6 = arith.constant 6 : index
    %c0_15 = arith.constant 0 : index
    %12 = vector.load %arg8[%c6, %c0_15] : memref<24x2xf32, #tpu.memory_space<vmem>>, vector<16x2xf32>
    %13 = tpu.concatenate %6, %7, %8, %9, %10, %11, %12 in 1 : vector<16x2xf32>, vector<16x2xf32>, vector<16x2xf32>, vector<16x2xf32>, vector<16x2xf32>, vector<16x2xf32>, vector<16x2xf32> -> vector<16x14xf32>
    %c0_16 = arith.constant 0 : index
    %c0_17 = arith.constant 0 : index
    %c0_18 = arith.constant 0 : index
    %14 = vector.load %arg4[%c0_16, %c0_17, %c0_18] : memref<1x14x8xf32, #tpu.memory_space<vmem>>, vector<1x14x8xf32>
    %15 = vector.shape_cast %14 : vector<1x14x8xf32> to vector<14x8xf32>
    %cst = arith.constant dense<0.000000e+00> : vector<16x8xf32>
    %16 = tpu.matmul %13, %15, %cst {dimension_numbers = #tpu.dot_dimension_numbers<[1], [0], [0], [1], [0, 0, 1, 1], [], []>} : vector<16x14xf32>, vector<14x8xf32>, vector<16x8xf32> -> vector<16x8xf32>
    %c0_19 = arith.constant 0 : index
    %c0_20 = arith.constant 0 : index
    %17 = vector.load %arg5[%c0_19, %c0_20] : memref<1x8xf32, #tpu.memory_space<vmem>>, vector<1x8xf32>
    %18 = vector.broadcast %17 : vector<1x8xf32> to vector<16x8xf32>
    %19 = arith.mulf %16, %18 : vector<16x8xf32>
    %c0_21 = arith.constant 0 : index
    %c0_22 = arith.constant 0 : index
    %20 = vector.load %arg6[%c0_21, %c0_22] : memref<1x8xf32, #tpu.memory_space<vmem>>, vector<1x8xf32>
    %21 = vector.broadcast %20 : vector<1x8xf32> to vector<16x8xf32>
    %22 = arith.addf %19, %21 : vector<16x8xf32>
    %cst_23 = arith.constant 2.000000e-01 : f32
    %23 = vector.broadcast %cst_23 : f32 to vector<16x8xf32>
    %24 = arith.mulf %23, %22 : vector<16x8xf32>
    %25 = arith.maximumf %22, %24 : vector<16x8xf32>
    %c0_24 = arith.constant 0 : index
    %c0_25 = arith.constant 0 : index
    %c0_26 = arith.constant 0 : index
    %26 = vector.load %arg7[%c0_24, %c0_25, %c0_26] : memref<1x16x8xf32, #tpu.memory_space<vmem>>, vector<1x16x8xf32>
    %27 = vector.shape_cast %26 : vector<1x16x8xf32> to vector<16x8xf32>
    %28 = vector.shape_cast %25 : vector<16x8xf32> to vector<1x16x8xf32>
    tpu.vector_store %arg7[%c0_24, %c0_25, %c0_26], %28 {strides = array<i32>} : memref<1x16x8xf32, #tpu.memory_space<vmem>>, vector<1x16x8xf32>,
    return
  }
  func.func @transform_0(%arg0: i32, %arg1: i32) -> (i32, i32, i32) {
    %c0_i32 = arith.constant 0 : i32
    %c0_i32_0 = arith.constant 0 : i32
    return %arg0, %arg1, %c0_i32 : i32, i32, i32
  }
  func.func @transform_1(%arg0: i32, %arg1: i32) -> (i32, i32, i32) {
    %c1_i32 = arith.constant 1 : i32
    %0 = arith.addi %arg1, %c1_i32 : i32
    %c2_i32 = arith.constant 2 : i32
    %1 = arith.muli %0, %c2_i32 : i32
    %c0_i32 = arith.constant 0 : i32
    %c0_i32_0 = arith.constant 0 : i32
    return %arg0, %1, %c0_i32 : i32, i32, i32
  }
  func.func @transform_2(%arg0: i32, %arg1: i32) -> (i32, i32, i32) {
    %c0_i32 = arith.constant 0 : i32
    %c0_i32_0 = arith.constant 0 : i32
    %c0_i32_1 = arith.constant 0 : i32
    %c0_i32_2 = arith.constant 0 : i32
    return %c0_i32, %c0_i32_0, %c0_i32_1 : i32, i32, i32
  }
  func.func @transform_3(%arg0: i32, %arg1: i32) -> (i32, i32) {
    %c0_i32 = arith.constant 0 : i32
    %c0_i32_0 = arith.constant 0 : i32
    %c0_i32_1 = arith.constant 0 : i32
    return %c0_i32, %c0_i32_0 : i32, i32
  }
  func.func @transform_4(%arg0: i32, %arg1: i32) -> (i32, i32) {
    %c0_i32 = arith.constant 0 : i32
    %c0_i32_0 = arith.constant 0 : i32
    %c0_i32_1 = arith.constant 0 : i32
    return %c0_i32, %c0_i32_0 : i32, i32
  }
  func.func @transform_5(%arg0: i32, %arg1: i32) -> (i32, i32, i32) {
    %c0_i32 = arith.constant 0 : i32
    %c0_i32_0 = arith.constant 0 : i32
    return %arg0, %arg1, %c0_i32 : i32, i32, i32
  }
}

module attributes {stable_mosaic.version = 11 : i64} {
  func.func @_unit_kernel_halo(%arg0: i32, %arg1: i32, %arg2: memref<1x16x16xf32, #tpu.memory_space<vmem>>, %arg3: memref<1x8x16xf32, #tpu.memory_space<vmem>>, %arg4: memref<1x48x16xf32, #tpu.memory_space<vmem>>, %arg5: memref<1x16xf32, #tpu.memory_space<vmem>>, %arg6: memref<1x16xf32, #tpu.memory_space<vmem>>, %arg7: memref<1x16x16xf32, #tpu.memory_space<vmem>>, %arg8: memref<24x16xf32, #tpu.memory_space<vmem>>) attributes {dimension_semantics = [#tpu.dimension_semantics<parallel>, #tpu.dimension_semantics<parallel>], iteration_bounds = array<i64: 2, 2>, scalar_prefetch = 0 : i64, scratch_operands = 1 : i64, tpu.core_type = #tpu.core_type<tc>, window_params = [{transform_indices = @transform_0, window_bounds = array<i64: 1, 16, 16>}, {transform_indices = @transform_1, window_bounds = array<i64: 1, 8, 16>}, {pipeline_mode = #tpu.pipeline_mode<synchronous>, transform_indices = @transform_2, window_bounds = array<i64: 1, 48, 16>}, {pipeline_mode = #tpu.pipeline_mode<synchronous>, transform_indices = @transform_3, window_bounds = array<i64: 1, 16>}, {pipeline_mode = #tpu.pipeline_mode<synchronous>, transform_indices = @transform_4, window_bounds = array<i64: 1, 16>}, {transform_indices = @transform_5, window_bounds = array<i64: 1, 16, 16>}]} {
    %c0 = arith.constant 0 : index
    %c0_0 = arith.constant 0 : index
    %c0_1 = arith.constant 0 : index
    %0 = vector.load %arg2[%c0, %c0_0, %c0_1] : memref<1x16x16xf32, #tpu.memory_space<vmem>>, vector<1x16x16xf32>
    %1 = vector.shape_cast %0 : vector<1x16x16xf32> to vector<16x16xf32>
    %c0_2 = arith.constant 0 : index
    %c0_3 = arith.constant 0 : index
    %2 = vector.load %arg8[%c0_2, %c0_3] : memref<24x16xf32, #tpu.memory_space<vmem>>, vector<16x16xf32>
    tpu.vector_store %arg8[%c0_2, %c0_3], %1 {strides = array<i32>} : memref<24x16xf32, #tpu.memory_space<vmem>>, vector<16x16xf32>,
    %c0_4 = arith.constant 0 : index
    %c0_5 = arith.constant 0 : index
    %c0_6 = arith.constant 0 : index
    %3 = vector.load %arg3[%c0_4, %c0_5, %c0_6] : memref<1x8x16xf32, #tpu.memory_space<vmem>>, vector<1x8x16xf32>
    %4 = vector.shape_cast %3 : vector<1x8x16xf32> to vector<8x16xf32>
    %c16 = arith.constant 16 : index
    %c0_7 = arith.constant 0 : index
    %5 = vector.load %arg8[%c16, %c0_7] : memref<24x16xf32, #tpu.memory_space<vmem>>, vector<8x16xf32>
    tpu.vector_store %arg8[%c16, %c0_7], %4 {strides = array<i32>} : memref<24x16xf32, #tpu.memory_space<vmem>>, vector<8x16xf32>,
    %c0_8 = arith.constant 0 : index
    %c0_9 = arith.constant 0 : index
    %6 = vector.load %arg8[%c0_8, %c0_9] : memref<24x16xf32, #tpu.memory_space<vmem>>, vector<16x16xf32>
    %c1 = arith.constant 1 : index
    %c0_10 = arith.constant 0 : index
    %7 = vector.load %arg8[%c1, %c0_10] : memref<24x16xf32, #tpu.memory_space<vmem>>, vector<16x16xf32>
    %c2 = arith.constant 2 : index
    %c0_11 = arith.constant 0 : index
    %8 = vector.load %arg8[%c2, %c0_11] : memref<24x16xf32, #tpu.memory_space<vmem>>, vector<16x16xf32>
    %9 = tpu.concatenate %6, %7, %8 in 1 : vector<16x16xf32>, vector<16x16xf32>, vector<16x16xf32> -> vector<16x48xf32>
    %c0_12 = arith.constant 0 : index
    %c0_13 = arith.constant 0 : index
    %c0_14 = arith.constant 0 : index
    %10 = vector.load %arg4[%c0_12, %c0_13, %c0_14] : memref<1x48x16xf32, #tpu.memory_space<vmem>>, vector<1x48x16xf32>
    %11 = vector.shape_cast %10 : vector<1x48x16xf32> to vector<48x16xf32>
    %cst = arith.constant dense<0.000000e+00> : vector<16x16xf32>
    %12 = tpu.matmul %9, %11, %cst {dimension_numbers = #tpu.dot_dimension_numbers<[1], [0], [0], [1], [0, 0, 1, 1], [], []>} : vector<16x48xf32>, vector<48x16xf32>, vector<16x16xf32> -> vector<16x16xf32>
    %c0_15 = arith.constant 0 : index
    %c0_16 = arith.constant 0 : index
    %13 = vector.load %arg5[%c0_15, %c0_16] : memref<1x16xf32, #tpu.memory_space<vmem>>, vector<1x16xf32>
    %14 = vector.broadcast %13 : vector<1x16xf32> to vector<16x16xf32>
    %15 = arith.mulf %12, %14 : vector<16x16xf32>
    %c0_17 = arith.constant 0 : index
    %c0_18 = arith.constant 0 : index
    %16 = vector.load %arg6[%c0_17, %c0_18] : memref<1x16xf32, #tpu.memory_space<vmem>>, vector<1x16xf32>
    %17 = vector.broadcast %16 : vector<1x16xf32> to vector<16x16xf32>
    %18 = arith.addf %15, %17 : vector<16x16xf32>
    %cst_19 = arith.constant 2.000000e-01 : f32
    %19 = vector.broadcast %cst_19 : f32 to vector<16x16xf32>
    %20 = arith.mulf %19, %18 : vector<16x16xf32>
    %21 = arith.maximumf %18, %20 : vector<16x16xf32>
    %c0_20 = arith.constant 0 : index
    %c0_21 = arith.constant 0 : index
    %c0_22 = arith.constant 0 : index
    %22 = vector.load %arg7[%c0_20, %c0_21, %c0_22] : memref<1x16x16xf32, #tpu.memory_space<vmem>>, vector<1x16x16xf32>
    %23 = vector.shape_cast %22 : vector<1x16x16xf32> to vector<16x16xf32>
    %24 = vector.shape_cast %21 : vector<16x16xf32> to vector<1x16x16xf32>
    tpu.vector_store %arg7[%c0_20, %c0_21, %c0_22], %24 {strides = array<i32>} : memref<1x16x16xf32, #tpu.memory_space<vmem>>, vector<1x16x16xf32>,
    return
  }
  func.func @transform_0(%arg0: i32, %arg1: i32) -> (i32, i32, i32) {
    %c0_i32 = arith.constant 0 : i32
    %c0_i32_0 = arith.constant 0 : i32
    return %arg0, %arg1, %c0_i32 : i32, i32, i32
  }
  func.func @transform_1(%arg0: i32, %arg1: i32) -> (i32, i32, i32) {
    %c1_i32 = arith.constant 1 : i32
    %0 = arith.addi %arg1, %c1_i32 : i32
    %c2_i32 = arith.constant 2 : i32
    %1 = arith.muli %0, %c2_i32 : i32
    %c0_i32 = arith.constant 0 : i32
    %c0_i32_0 = arith.constant 0 : i32
    return %arg0, %1, %c0_i32 : i32, i32, i32
  }
  func.func @transform_2(%arg0: i32, %arg1: i32) -> (i32, i32, i32) {
    %c0_i32 = arith.constant 0 : i32
    %c0_i32_0 = arith.constant 0 : i32
    %c0_i32_1 = arith.constant 0 : i32
    %c0_i32_2 = arith.constant 0 : i32
    return %c0_i32, %c0_i32_0, %c0_i32_1 : i32, i32, i32
  }
  func.func @transform_3(%arg0: i32, %arg1: i32) -> (i32, i32) {
    %c0_i32 = arith.constant 0 : i32
    %c0_i32_0 = arith.constant 0 : i32
    %c0_i32_1 = arith.constant 0 : i32
    return %c0_i32, %c0_i32_0 : i32, i32
  }
  func.func @transform_4(%arg0: i32, %arg1: i32) -> (i32, i32) {
    %c0_i32 = arith.constant 0 : i32
    %c0_i32_0 = arith.constant 0 : i32
    %c0_i32_1 = arith.constant 0 : i32
    return %c0_i32, %c0_i32_0 : i32, i32
  }
  func.func @transform_5(%arg0: i32, %arg1: i32) -> (i32, i32, i32) {
    %c0_i32 = arith.constant 0 : i32
    %c0_i32_0 = arith.constant 0 : i32
    return %arg0, %arg1, %c0_i32 : i32, i32, i32
  }
}

module attributes {stable_mosaic.version = 11 : i64} {
  func.func @_unit_kernel_halo(%arg0: i32, %arg1: i32, %arg2: memref<1x16x32xf32, #tpu.memory_space<vmem>>, %arg3: memref<1x8x32xf32, #tpu.memory_space<vmem>>, %arg4: memref<2x80x4xf32, #tpu.memory_space<vmem>>, %arg5: memref<1x8xf32, #tpu.memory_space<vmem>>, %arg6: memref<1x8xf32, #tpu.memory_space<vmem>>, %arg7: memref<1x16x8xf32, #tpu.memory_space<vmem>>, %arg8: memref<24x32xf32, #tpu.memory_space<vmem>>) attributes {dimension_semantics = [#tpu.dimension_semantics<parallel>, #tpu.dimension_semantics<parallel>], iteration_bounds = array<i64: 2, 1>, scalar_prefetch = 0 : i64, scratch_operands = 1 : i64, tpu.core_type = #tpu.core_type<tc>, window_params = [{transform_indices = @transform_0, window_bounds = array<i64: 1, 16, 32>}, {transform_indices = @transform_1, window_bounds = array<i64: 1, 8, 32>}, {pipeline_mode = #tpu.pipeline_mode<synchronous>, transform_indices = @transform_2, window_bounds = array<i64: 2, 80, 4>}, {pipeline_mode = #tpu.pipeline_mode<synchronous>, transform_indices = @transform_3, window_bounds = array<i64: 1, 8>}, {pipeline_mode = #tpu.pipeline_mode<synchronous>, transform_indices = @transform_4, window_bounds = array<i64: 1, 8>}, {transform_indices = @transform_5, window_bounds = array<i64: 1, 16, 8>}]} {
    %c0 = arith.constant 0 : index
    %c0_0 = arith.constant 0 : index
    %c0_1 = arith.constant 0 : index
    %0 = vector.load %arg2[%c0, %c0_0, %c0_1] : memref<1x16x32xf32, #tpu.memory_space<vmem>>, vector<1x16x32xf32>
    %1 = vector.shape_cast %0 : vector<1x16x32xf32> to vector<16x32xf32>
    %c0_2 = arith.constant 0 : index
    %c0_3 = arith.constant 0 : index
    %2 = vector.load %arg8[%c0_2, %c0_3] : memref<24x32xf32, #tpu.memory_space<vmem>>, vector<16x32xf32>
    tpu.vector_store %arg8[%c0_2, %c0_3], %1 {strides = array<i32>} : memref<24x32xf32, #tpu.memory_space<vmem>>, vector<16x32xf32>,
    %c0_4 = arith.constant 0 : index
    %c0_5 = arith.constant 0 : index
    %c0_6 = arith.constant 0 : index
    %3 = vector.load %arg3[%c0_4, %c0_5, %c0_6] : memref<1x8x32xf32, #tpu.memory_space<vmem>>, vector<1x8x32xf32>
    %4 = vector.shape_cast %3 : vector<1x8x32xf32> to vector<8x32xf32>
    %c16 = arith.constant 16 : index
    %c0_7 = arith.constant 0 : index
    %5 = vector.load %arg8[%c16, %c0_7] : memref<24x32xf32, #tpu.memory_space<vmem>>, vector<8x32xf32>
    tpu.vector_store %arg8[%c16, %c0_7], %4 {strides = array<i32>} : memref<24x32xf32, #tpu.memory_space<vmem>>, vector<8x32xf32>,
    %c0_8 = arith.constant 0 : index
    %c0_9 = arith.constant 0 : index
    %6 = vector.load %arg8[%c0_8, %c0_9] : memref<24x32xf32, #tpu.memory_space<vmem>>, vector<16x16xf32>
    %c1 = arith.constant 1 : index
    %c0_10 = arith.constant 0 : index
    %7 = vector.load %arg8[%c1, %c0_10] : memref<24x32xf32, #tpu.memory_space<vmem>>, vector<16x16xf32>
    %c2 = arith.constant 2 : index
    %c0_11 = arith.constant 0 : index
    %8 = vector.load %arg8[%c2, %c0_11] : memref<24x32xf32, #tpu.memory_space<vmem>>, vector<16x16xf32>
    %c3 = arith.constant 3 : index
    %c0_12 = arith.constant 0 : index
    %9 = vector.load %arg8[%c3, %c0_12] : memref<24x32xf32, #tpu.memory_space<vmem>>, vector<16x16xf32>
    %c4 = arith.constant 4 : index
    %c0_13 = arith.constant 0 : index
    %10 = vector.load %arg8[%c4, %c0_13] : memref<24x32xf32, #tpu.memory_space<vmem>>, vector<16x16xf32>
    %11 = tpu.concatenate %6, %7, %8, %9, %10 in 1 : vector<16x16xf32>, vector<16x16xf32>, vector<16x16xf32>, vector<16x16xf32>, vector<16x16xf32> -> vector<16x80xf32>
    %c0_14 = arith.constant 0 : index
    %c0_15 = arith.constant 0 : index
    %c0_16 = arith.constant 0 : index
    %12 = vector.load %arg4[%c0_14, %c0_15, %c0_16] : memref<2x80x4xf32, #tpu.memory_space<vmem>>, vector<1x80x4xf32>
    %13 = vector.shape_cast %12 : vector<1x80x4xf32> to vector<80x4xf32>
    %cst = arith.constant dense<0.000000e+00> : vector<16x4xf32>
    %14 = tpu.matmul %11, %13, %cst {dimension_numbers = #tpu.dot_dimension_numbers<[1], [0], [0], [1], [0, 0, 1, 1], [], []>} : vector<16x80xf32>, vector<80x4xf32>, vector<16x4xf32> -> vector<16x4xf32>
    %c0_17 = arith.constant 0 : index
    %c0_18 = arith.constant 0 : index
    %15 = vector.load %arg5[%c0_17, %c0_18] : memref<1x8xf32, #tpu.memory_space<vmem>>, vector<1x4xf32>
    %16 = vector.broadcast %15 : vector<1x4xf32> to vector<16x4xf32>
    %17 = arith.mulf %14, %16 : vector<16x4xf32>
    %c0_19 = arith.constant 0 : index
    %c0_20 = arith.constant 0 : index
    %18 = vector.load %arg6[%c0_19, %c0_20] : memref<1x8xf32, #tpu.memory_space<vmem>>, vector<1x4xf32>
    %19 = vector.broadcast %18 : vector<1x4xf32> to vector<16x4xf32>
    %20 = arith.addf %17, %19 : vector<16x4xf32>
    %c0_21 = arith.constant 0 : index
    %c0_22 = arith.constant 0 : index
    %c0_23 = arith.constant 0 : index
    %21 = vector.load %arg7[%c0_21, %c0_22, %c0_23] : memref<1x16x8xf32, #tpu.memory_space<vmem>>, vector<1x16x4xf32>
    %22 = vector.shape_cast %21 : vector<1x16x4xf32> to vector<16x4xf32>
    %23 = vector.shape_cast %20 : vector<16x4xf32> to vector<1x16x4xf32>
    tpu.vector_store %arg7[%c0_21, %c0_22, %c0_23], %23 {strides = array<i32>} : memref<1x16x8xf32, #tpu.memory_space<vmem>>, vector<1x16x4xf32>,
    %c0_24 = arith.constant 0 : index
    %c16_25 = arith.constant 16 : index
    %24 = vector.load %arg8[%c0_24, %c16_25] : memref<24x32xf32, #tpu.memory_space<vmem>>, vector<16x16xf32>
    %c1_26 = arith.constant 1 : index
    %c16_27 = arith.constant 16 : index
    %25 = vector.load %arg8[%c1_26, %c16_27] : memref<24x32xf32, #tpu.memory_space<vmem>>, vector<16x16xf32>
    %c2_28 = arith.constant 2 : index
    %c16_29 = arith.constant 16 : index
    %26 = vector.load %arg8[%c2_28, %c16_29] : memref<24x32xf32, #tpu.memory_space<vmem>>, vector<16x16xf32>
    %c3_30 = arith.constant 3 : index
    %c16_31 = arith.constant 16 : index
    %27 = vector.load %arg8[%c3_30, %c16_31] : memref<24x32xf32, #tpu.memory_space<vmem>>, vector<16x16xf32>
    %c4_32 = arith.constant 4 : index
    %c16_33 = arith.constant 16 : index
    %28 = vector.load %arg8[%c4_32, %c16_33] : memref<24x32xf32, #tpu.memory_space<vmem>>, vector<16x16xf32>
    %29 = tpu.concatenate %24, %25, %26, %27, %28 in 1 : vector<16x16xf32>, vector<16x16xf32>, vector<16x16xf32>, vector<16x16xf32>, vector<16x16xf32> -> vector<16x80xf32>
    %c1_34 = arith.constant 1 : index
    %c0_35 = arith.constant 0 : index
    %c0_36 = arith.constant 0 : index
    %30 = vector.load %arg4[%c1_34, %c0_35, %c0_36] : memref<2x80x4xf32, #tpu.memory_space<vmem>>, vector<1x80x4xf32>
    %31 = vector.shape_cast %30 : vector<1x80x4xf32> to vector<80x4xf32>
    %cst_37 = arith.constant dense<0.000000e+00> : vector<16x4xf32>
    %32 = tpu.matmul %29, %31, %cst_37 {dimension_numbers = #tpu.dot_dimension_numbers<[1], [0], [0], [1], [0, 0, 1, 1], [], []>} : vector<16x80xf32>, vector<80x4xf32>, vector<16x4xf32> -> vector<16x4xf32>
    %c0_38 = arith.constant 0 : index
    %c4_39 = arith.constant 4 : index
    %33 = vector.load %arg5[%c0_38, %c4_39] : memref<1x8xf32, #tpu.memory_space<vmem>>, vector<1x4xf32>
    %34 = vector.broadcast %33 : vector<1x4xf32> to vector<16x4xf32>
    %35 = arith.mulf %32, %34 : vector<16x4xf32>
    %c0_40 = arith.constant 0 : index
    %c4_41 = arith.constant 4 : index
    %36 = vector.load %arg6[%c0_40, %c4_41] : memref<1x8xf32, #tpu.memory_space<vmem>>, vector<1x4xf32>
    %37 = vector.broadcast %36 : vector<1x4xf32> to vector<16x4xf32>
    %38 = arith.addf %35, %37 : vector<16x4xf32>
    %c0_42 = arith.constant 0 : index
    %c0_43 = arith.constant 0 : index
    %c4_44 = arith.constant 4 : index
    %39 = vector.load %arg7[%c0_42, %c0_43, %c4_44] : memref<1x16x8xf32, #tpu.memory_space<vmem>>, vector<1x16x4xf32>
    %40 = vector.shape_cast %39 : vector<1x16x4xf32> to vector<16x4xf32>
    %41 = vector.shape_cast %38 : vector<16x4xf32> to vector<1x16x4xf32>
    tpu.vector_store %arg7[%c0_42, %c0_43, %c4_44], %41 {strides = array<i32>} : memref<1x16x8xf32, #tpu.memory_space<vmem>>, vector<1x16x4xf32>,
    return
  }
  func.func @transform_0(%arg0: i32, %arg1: i32) -> (i32, i32, i32) {
    %c0_i32 = arith.constant 0 : i32
    %c0_i32_0 = arith.constant 0 : i32
    return %arg0, %arg1, %c0_i32 : i32, i32, i32
  }
  func.func @transform_1(%arg0: i32, %arg1: i32) -> (i32, i32, i32) {
    %c1_i32 = arith.constant 1 : i32
    %0 = arith.addi %arg1, %c1_i32 : i32
    %c2_i32 = arith.constant 2 : i32
    %1 = arith.muli %0, %c2_i32 : i32
    %c0_i32 = arith.constant 0 : i32
    %c0_i32_0 = arith.constant 0 : i32
    return %arg0, %1, %c0_i32 : i32, i32, i32
  }
  func.func @transform_2(%arg0: i32, %arg1: i32) -> (i32, i32, i32) {
    %c0_i32 = arith.constant 0 : i32
    %c0_i32_0 = arith.constant 0 : i32
    %c0_i32_1 = arith.constant 0 : i32
    %c0_i32_2 = arith.constant 0 : i32
    return %c0_i32, %c0_i32_0, %c0_i32_1 : i32, i32, i32
  }
  func.func @transform_3(%arg0: i32, %arg1: i32) -> (i32, i32) {
    %c0_i32 = arith.constant 0 : i32
    %c0_i32_0 = arith.constant 0 : i32
    %c0_i32_1 = arith.constant 0 : i32
    return %c0_i32, %c0_i32_0 : i32, i32
  }
  func.func @transform_4(%arg0: i32, %arg1: i32) -> (i32, i32) {
    %c0_i32 = arith.constant 0 : i32
    %c0_i32_0 = arith.constant 0 : i32
    %c0_i32_1 = arith.constant 0 : i32
    return %c0_i32, %c0_i32_0 : i32, i32
  }
  func.func @transform_5(%arg0: i32, %arg1: i32) -> (i32, i32, i32) {
    %c0_i32 = arith.constant 0 : i32
    %c0_i32_0 = arith.constant 0 : i32
    return %arg0, %arg1, %c0_i32 : i32, i32, i32
  }
}

</mosaic_0001>

<bundles_post_ra>
// kernel: tpu_custom_call.1
= control target key start
LH: loop header
LB: loop body
LE: loop exit
PB: predicated region body
PF: predicated region fallthrough
CT: control target
= control target key end

     0   :  { %7 = vsyncpa [#allocation3], 0  ;;  %s876_s0 = inlined_call_operand.hbm [shape: bf16[64,128], index: 0, kind: input, shape index: {}]   ;;  %s877_s1 = inlined_call_operand.hbm [shape: bf16[128,128], index: 1, kind: input, shape index: {}]   ;;  %s878_s2 = inlined_call_operand.hbm [shape: f32[64,128], index: 2, kind: output, shape index: {}]  }
   0x1   :  { %9 = vsyncpa [#allocation3 + $0x1], 0 }
   0x2   :  { %10 = vsyncpa [#allocation6], 0 }
   0x3   :  { %11 = vsyncpa [#allocation4], 0 }
   0x4   :  { %13 = vsyncpa [#allocation4 + $0x1], 0  ;;  %s674_s9 = smov 0   ;;  %s676_s10 = smov 0  }
   0x5   :  { %s678_s11 = smov 0   ;;  %s680_s12 = smov 0  }
   0x6 LB: > { %s695_s13 = sadd.s32 4294967295, %s648_s12   ;;  %s392_s14 = sadd.s32 4294967294, %s648_s12   ;;  %s648_s12 = sphi %s680_s12, %s897_s12   ;;  %s644_s11 = sphi %s678_s11, %s896_s11   ;;  %s640_s10 = sphi %s676_s10, %s895_s10   ;;  %s636_s9 = sphi %s674_s9, %s894_s9  }
   0x7   : > { %p39_p0 = scmp.ne.s32.totalorder %s640_s10, %s636_s9  ;;  %p879_p1 = scmp.eq.s32.totalorder %s695_s13, 0 }
   0x8   : > { %p90_p3 = scmp.eq.s32.totalorder %s392_s14, 3  ;;  %p393_p5 = scmp.ge.s32.totalorder %s648_s12, 1 }
   0x9   : > { %p704_p4 = por %p879_p1, %p39_p0  ;;  %p97_p7 = scmp.lt.s32.totalorder %s648_s12, 5 }
   0xa   : > { %p709_p6 = por %p90_p3, %p39_p0  ;;  %s650_s18 = smov [#allocation5]  }
   0xb   : > { %s882_s15 = scalar_select %p704_p4, 1, 0 }
   0xc   : > { %s883_s16 = scalar_select %p709_p6, 1, 0 }
   0xd   : > { %p714_p8 = pnand %p393_p5, %p97_p7  ;;  %s109_s19 = sshll.u32 %s650_s18, 4  ;;  %s110_s19 = int_to_ptr.vmem [resolvable:$true] %s109_s19 }
   0xe   : > { %s727_s21 = sadd.s32 1, %s648_s12   ;;  %s26_s22 = sadd.s32 1, %s644_s11 }
   0xf   : > { %s884_s17 = scalar_select %p714_p8, 1, 0 }
  0x10   : > { %p456_p9 = pneg %p714_p8  ;;  %s23_s23 = ssub.s32 %s648_s12, %s727_s21 }
  0x11   : > { %s520_s26 = scalar_lea.hbm %s877_s1, 1024 }
  0x12   : > { %p722_p10 = pnand %p456_p9, %p879_p1  ;;  %p521_p11 = scmp.ne.s32.totalorder %s877_s1, %s520_s26 }
  0x13   : > { %p527_p3 = scmp.lt.u32.totalorder %s520_s26, %s877_s1 }
  0x14   : > { %p522_p12 = pneg %p722_p10 }
  0x16   : > { %p523_p13 = pnand %p522_p12, %p521_p11 }
  0x18   : > { %p524_p0 = pneg %p523_p13 }
  0x1a   : > { %p529_p5 = pnand %p527_p3, %p524_p0 }
  0x1c   : > { %532 = shalt.err (!%p529_p5)
}
  0x1d   : > { %s533_s3 = scalar_lea.vmem %s110_s19, 1024  ;;  %p541_p2 = scmp.lt.s32.totalorder %s110_s19, %s110_s19 }
  0x1e   : > { %p534_p7 = scmp.ne.s32.totalorder %s110_s19, %s533_s3  ;;  %p542_p6 = scmp.lt.s32.totalorder %s533_s3, %s533_s3 }
  0x20   : > { %p536_p9 = pnand %p534_p7, %p522_p12  ;;  %p543_p4 = por %p542_p6, %p541_p2 }
  0x22   : > { %p537_p1 = pneg %p536_p9 }
  0x24   : > { %p544_p8 = pnand %p543_p4, %p537_p1 }
  0x26   : > { %547 = shalt.err (!%p544_p8)
}
  0x27   : > { %s651_s4 = smov 64   ;;  %s652_s5 = smov 4  }
  0x28   : > { %459 = dma.hbm_to_vmem [thread:$0]  (!%p722_p10), %s877_s1, 1024, %s110_s19, [#allocation6], %s651_s4, %s651_s4, %s652_s5  }
  0x29   : > { %p24_p1 = scmp.eq.s32.totalorder %s23_s23, 0  ;;  %p33_p2 = scmp.ne.s32.totalorder %s644_s11, %s640_s10 }
  0x2a   : > { %p34_p4 = scmp.eq.s32.totalorder %s648_s12, 0  ;;  %p469_p6 = scmp.lt.s32.totalorder %s648_s12, 4 }
  0x2b   : > { %s756_s8 = scalar_select %p24_p1, %s644_s11, %s26_s22  }
  0x2c   : > { %p35_p8 = por %p34_p4, %p33_p2  ;;  %p886_p11 = scmp.eq.s32.totalorder %s695_s13, 3 }
  0x2d   : > { %s123_s18 = sand.u32 1, %s644_s11   ;;  %s417_s20 = sshll.u32 %s648_s12, 7 }
  0x2e   : > { %p760_p12 = por %p886_p11, %p33_p2  ;;  %s396_s24 = sshll.u32 %s123_s18, 3 }
  0x2f   : > { %s769_s27 = scalar_lea.hbm %s876_s0, %s417_s20  ;;  %s127_s19 = scalar_lea.vmem [#allocation2], %s396_s24 }
  0x30   : > { %s134_s22 = sshll.u32 %s127_s19, 4  ;;  %p771_p10 = pnand %p469_p6, %p35_p8  ;;  %s775_s22 = int_to_ptr.vmem [resolvable:$true] %s134_s22 }
  0x31   : > { %s777_s28 = scalar_lea.sflag [#allocation3], %s123_s18  ;;  %s548_s29 = scalar_lea.hbm %s769_s27, 128 }
  0x32   : > { %p549_p13 = scmp.ne.s32.totalorder %s769_s27, %s548_s29  ;;  %p550_p0 = pneg %p771_p10 }
  0x33   : > { %s553_s6 = scalar_lea.hbm %s876_s0, 512  ;;  %p554_p7 = scmp.lt.u32.totalorder %s769_s27, %s876_s0 }
  0x34   : > { %p551_p3 = pnand %p550_p0, %p549_p13  ;;  %p555_p9 = scmp.lt.u32.totalorder %s553_s6, %s548_s29 }
  0x35   : > { %p557_p2 = scmp.lt.u32.totalorder %s548_s29, %s769_s27 }
  0x36   : > { %p552_p5 = pneg %p551_p3  ;;  %p556_p1 = por %p555_p9, %p554_p7 }
  0x38   : > { %p558_p4 = por %p557_p2, %p556_p1 }
  0x3a   : > { %p559_p6 = pnand %p558_p4, %p552_p5 }
  0x3c   : > { %562 = shalt.err (!%p559_p6)
}
  0x3d   : > { %s563_s18 = scalar_lea.vmem %s775_s22, 128  ;;  %s653_s24 = smov [#allocation2]  }
  0x3e   : > { %p564_p8 = scmp.ne.s32.totalorder %s775_s22, %s563_s18  ;;  %s568_s25 = sshll.u32 %s653_s24, 4  ;;  %s569_s25 = int_to_ptr.vmem [resolvable:$false] %s568_s25 }
  0x3f   : > { %s570_s26 = scalar_lea.vmem %s569_s25, 256  ;;  %p571_p3 = scmp.lt.s32.totalorder %s775_s22, %s569_s25 }
  0x40   : > { %p566_p11 = pnand %p564_p8, %p550_p0  ;;  %p572_p7 = scmp.lt.s32.totalorder %s570_s26, %s563_s18 }
  0x42   : > { %p567_p13 = pneg %p566_p11  ;;  %p573_p9 = por %p572_p7, %p571_p3 }
  0x44   : > { %p574_p1 = pnand %p573_p9, %p567_p13 }
  0x46   : > { %577 = shalt.err (!%p574_p1)
}
  0x47   : > { %463 = dma.hbm_to_vmem [thread:$0]  (!%p771_p10), %s769_s27, 128, %s775_s22, %s777_s28, %s651_s4, %s651_s4, %s652_s5  }
  0x48   : > { %p889_p0 = scmp.ne.s32.totalorder %s884_s17, 0 }
  0x49   : > { %s811_s19 = sand.u32 (!%p889_p0), 1, %s640_s10   ;;  %p890_p5 = scmp.ne.s32.totalorder (!%p889_p0), %s882_s15, 0 }
  0x4a   : > { %146 = sbr.rel (%p889_p0) target bundleno = 347 (0x15b), region = 28  ;;  %s400_s29 = sshll.u32 (!%p889_p0), %s811_s19, 3 }
  0x4b   : > { %s149_s30 = scalar_lea.sflag (!%p889_p0), [#allocation3], %s811_s19  ;;  %s815_s3 = scalar_lea.vmem (!%p889_p0), [#allocation2], %s400_s29 }
  0x51   : > { %623 = dma.done.wait (%p890_p5), %s149_s30, 128  }
  0x52   : > { %625 = vsyncadd (%p890_p5), %s149_s30, 4294967168  ;;  %p891_p10 = scmp.eq.s32.totalorder %s695_s13, 0 }
  0x54   : > { %627 = dma.done.wait (%p891_p10), [#allocation6], 1024   ;;  %p892_p2 = pmov %p891_p10 }
  0x55   : > { %v654_v0 = vmov 0.0   ;;  %vm655_vm0 = vmmov 0   ;;  %v511_v1 = vld [vmem:[#allocation5] sm:$0xff]   ;;  %v512_v2 = vld [vmem:[#allocation5 + $0x8] sm:$0xff]   ;;  %v513_v3 = vld [vmem:[#allocation5 + $0x10] sm:$0xff]   ;;  %s402_s15 = sshll.u32 %s811_s19, 4 }
  0x56   : > { %629 = vsyncadd (%p892_p2), [#allocation6], 4294966272  ;;  %428 = vmatprep.subr.bf16.mxu0 %v654_v0  ;;  %444 = vmatprep.mubr.msk.bf16.mxu0 %vm655_vm0, %v654_v0  ;;  %v514_v4 = vld [vmem:[#allocation5 + $0x18] sm:$0xff]   ;;  %v515_v5 = vld [vmem:[#allocation5 + $0x20] sm:$0xff]   ;;  %s176_s17 = scalar_lea.vmem [#allocation7], %s402_s15  ;;  %s418_s5 = sshll.u32 %s695_s13, 8 }
  0x57   : > { %429 = vmatpush3.bf16.msra.mxu0 %v511_v1  ;;  %v516_v6 = vld [vmem:[#allocation5 + $0x28] sm:$0xff]   ;;  %v517_v7 = vld [vmem:[#allocation5 + $0x30] sm:$0xff]   ;;  %v518_v8 = vld [vmem:[#allocation5 + $0x38] sm:$0xff]   ;;  %s309_s4 = sshll.u32 %s176_s17, 4  ;;  %s833_s23 = scalar_lea.hbm %s878_s2, %s418_s5  ;;  %s828_s4 = int_to_ptr.vmem [resolvable:$true] %s309_s4 }
  0x58   : > { %430 = vmatprep.subr.bf16.mxu0 %v654_v0  ;;  %v519_v9 = vld [vmem:[%s815_s3] sm:$0xff]   ;;  %s296_s28 = scalar_lea.sflag [#allocation4], %s811_s19  ;;  %s578_s6 = scalar_lea.vmem %s828_s4, 256 }
  0x59   : > { %p579_p4 = scmp.ne.s32.totalorder %s828_s4, %s578_s6  ;;  %s656_s13 = smov [#allocation7]  }
  0x5a   : > { %s582_s7 = sshll.u32 %s656_s13, 4  ;;  %s583_s7 = int_to_ptr.vmem [resolvable:$false] %s582_s7 }
  0x5b   : > { %431 = vmatpush3.bf16.msra.mxu0 %v512_v2  ;;  %p580_p6 = pnand %p579_p4, %p760_p12  ;;  %s584_s20 = scalar_lea.vmem %s583_s7, 512 }
  0x5c   : > { %432 = vmatprep.subr.bf16.mxu0 %v654_v0  ;;  %p585_p11 = scmp.lt.s32.totalorder %s828_s4, %s583_s7  ;;  %p586_p13 = scmp.lt.s32.totalorder %s584_s20, %s578_s6 }
  0x5d   : > { %p581_p8 = pneg %p580_p6 }
  0x5e   : > { %p587_p3 = por %p586_p13, %p585_p11 }
  0x5f   : > { %433 = vmatpush3.bf16.msra.mxu0 %v513_v3 }
  0x60   : > { %434 = vmatprep.subr.bf16.mxu0 %v654_v0  ;;  %p588_p7 = pnand %p587_p3, %p581_p8 }
  0x63   : > { %435 = vmatpush3.bf16.msra.mxu0 %v514_v4 }
  0x64   : > { %436 = vmatprep.subr.bf16.mxu0 %v654_v0 }
  0x67   : > { %437 = vmatpush3.bf16.msra.mxu0 %v515_v5 }
  0x68   : > { %438 = vmatprep.subr.bf16.mxu0 %v654_v0 }
  0x6b   : > { %439 = vmatpush3.bf16.msra.mxu0 %v516_v6 }
  0x6c   : > { %440 = vmatprep.subr.bf16.mxu0 %v654_v0 }
  0x6f   : > { %441 = vmatpush3.bf16.msra.mxu0 %v517_v7 }
  0x70   : > { %442 = vmatprep.subr.bf16.mxu0 %v654_v0 }
  0x73   : > { %443 = vmatpush3.bf16.msra.mxu0 %v518_v8 }
  0x76   : > { %445 = vmatmul.mubr.bf16.vlgmr.msra.gmra.mrb[0].mxu0 %v519_v9 }
 0x149   : > { %v286_v10 = vpop.f32.mrb[0].mxu0 }
 0x14a   : > { %293 = vst [vmem:[%s176_s17] sm:$0xff] %v286_v10  ;;  %v446_v11 = vpop.f32.mrb[1].mxu0 }
 0x14b   : > { %v289_v12 = vpop.f32.mrb[2].mxu0 }
 0x14c   : > { %294 = vst [vmem:[%s176_s17 + $0x8] sm:$0xff] %v289_v12  ;;  %v447_v13 = vpop.f32.mrb[3].mxu0 }
 0x14d   : > { %591 = shalt.err (!%p588_p7)
}
 0x14e   : > { %s592_s18 = scalar_lea.hbm %s833_s23, 256  ;;  %s596_s26 = scalar_lea.hbm %s878_s2, 1024 }
 0x14f   : > { %p593_p9 = scmp.ne.s32.totalorder %s833_s23, %s592_s18  ;;  %p597_p5 = scmp.lt.u32.totalorder %s833_s23, %s878_s2 }
 0x150   : > { %p598_p10 = scmp.lt.u32.totalorder %s596_s26, %s592_s18  ;;  %p600_p4 = scmp.lt.u32.totalorder %s592_s18, %s833_s23 }
 0x151   : > { %p594_p1 = pnand %p593_p9, %p760_p12 }
 0x152   : > { %p599_p2 = por %p598_p10, %p597_p5 }
 0x153   : > { %p595_p0 = pneg %p594_p1 }
 0x154   : > { %p601_p6 = por %p600_p4, %p599_p2 }
 0x156   : > { %p602_p8 = pnand %p601_p6, %p595_p0 }
 0x158   : > { %605 = shalt.err (!%p602_p8)
}
 0x159   : > { %s657_s3 = smov 128   ;;  %s658_s15 = smov 8  }
 0x15a   : > { %454 = dma.vmem_to_hbm [thread:$0]  (%p760_p12), %s828_s4, 256, %s833_s23, %s296_s28, %s657_s3, %s657_s3, %s658_s15  }
 0x15b PF: > { %p471_p11 = scmp.ge.s32.totalorder %s648_s12, 2  ;;  %s324_s17 = sand.u32 1, %s636_s9  }
 0x15c   : > { %p893_p13 = scmp.ne.s32.totalorder %s883_s16, 0  ;;  %s325_s5 = scalar_lea.sflag [#allocation4], %s324_s17 }
 0x15e   : > { %p465_p3 = pnand %p471_p11, %p893_p13 }
 0x160   : > { %631 = dma.done.wait (!%p465_p3), %s325_s5, 256  }
 0x161   : > { %633 = vsyncadd (!%p465_p3), %s325_s5, 4294967040  ;;  %p16_p7 = scmp.ge.s32.totalorder %s727_s21, 6   ;;  %s894_s9 = smov %s640_s10 }
 0x162   : > { %s895_s10 = smov %s644_s11  ;;  %s896_s11 = smov %s756_s8 }
 0x163   : > { %s897_s12 = smov %s727_s21  ;;  %18 = sbr.rel (!%p16_p7) target bundleno = 6 (0x6), region = 77 }
 0x16a   :  { %330 = vsyncpa [#allocation3], 1 }
 0x16b   :  { %332 = vsyncpa [#allocation3 + $0x1], 1 }
 0x16c   :  { %333 = vsyncpa [#allocation6], 1 }
 0x16d   :  { %334 = vsyncpa [#allocation4], 1 }
 0x16e   :  { %336 = vsyncpa [#allocation4 + $0x1], 1 }

// kernel: forward.6
= control target key start
LH: loop header
LB: loop body
LE: loop exit
PB: predicated region body
PF: predicated region fallthrough
CT: control target
= control target key end

     0   :  { %s754_s18 = smov 0   ;;  %s756_s19 = smov 0   ;;  %s843_s0 = inlined_call_operand.vmem [shape: f32[2,24,32], index: 0, kind: input, shape index: {}, may-alias: {0,1}]   ;;  %s844_s1 = inlined_call_operand.vmem [shape: f32[2,24,32], index: 1, kind: input, shape index: {}, may-alias: {0,1}]   ;;  %s845_s2 = inlined_call_operand.vmem [shape: f32[1,96,32], index: 2, kind: input, shape index: {}]   ;;  %s846_s3 = inlined_call_operand.vmem [shape: f32[1,32], index: 3, kind: input, shape index: {}]   ;;  %s847_s4 = inlined_call_operand.vmem [shape: f32[1,32], index: 4, kind: input, shape index: {}]   ;;  %s848_s5 = inlined_call_operand.vmem [shape: f32[2,16,32], index: 5, kind: output, shape index: {}]  }
   0x1   :  { %s758_s20 = smov 0  }
   0x2 LB: > { %s27_s21 = sadd.s32 1, %s716_s19  ;;  %p590_p0 = scmp.ge.s32.totalorder %s720_s20, 1  ;;  %s720_s20 = sphi %s758_s20, %s15_s20   ;;  %s716_s19 = sphi %s756_s19, %s850_s19   ;;  %s712_s18 = sphi %s754_s18, %s849_s18  }
   0x3   : > { %p29_p1 = scmp.ge.s32.totalorder %s27_s21, 2  ;;  %p239_p2 = scmp.lt.s32.totalorder %s720_s20, 3 }
   0x5   : > { %s852_s21 = smov (%p29_p1, %s27_s21), 0  ;;  %p240_p3 = pnand %p590_p0, %p239_p2 }
   0x6   : > { %p294_p4 = scmp.lt.s32.totalorder (!%p240_p3), %s712_s18, 1  ;;  %v363_v0 = vld [vmem:[%s845_s2] sm:$0xff] (!%p240_p3)  ;;  %v364_v1 = vld [vmem:[%s845_s2 + $0x8] sm:$0xff] (!%p240_p3)  ;;  %v365_v2 = vld [vmem:[%s845_s2 + $0x10] sm:$0xff] (!%p240_p3)  ;;  %vm331_vm0 = vcmask (!%p240_p3), 261120   ;;  %s722_s8 = smov (!%p240_p3), 32  }
   0x7   : > { %243 = sbr.rel (%p240_p3) target bundleno = 370 (0x172), region = 40  ;;  %v645_v3 = vpack.c.bf16 (!%p240_p3), %v364_v1, %v363_v0  ;;  %v366_v4 = vld [vmem:[%s845_s2 + $0x18] sm:$0xff] (!%p240_p3)  ;;  %v367_v6 = vld [vmem:[%s845_s2 + $0x20] sm:$0xff] (!%p240_p3)  ;;  %v368_v7 = vld [vmem:[%s845_s2 + $0x28] sm:$0xff] (!%p240_p3)  ;;  %vm360_vm1 = vcmask (!%p240_p3), 523264   ;;  %vm375_vm2 = vcmask (!%p240_p3), 785408  }
   0x8   : > { %v649_v5 = vpack.c.bf16 (!%p240_p3), %v366_v4, %v365_v2  ;;  %v653_v8 = vpack.c.bf16 (!%p240_p3), %v368_v7, %v367_v6  ;;  %v369_v9 = vld [vmem:[%s845_s2 + $0x30] sm:$0xff] (!%p240_p3)  ;;  %v370_v10 = vld [vmem:[%s845_s2 + $0x38] sm:$0xff] (!%p240_p3)  ;;  %v371_v15 = vld [vmem:[%s845_s2 + $0x40] sm:$0xff] (!%p240_p3) }
   0x9   : > { %646 = vmatprep.subr.bf16.mxu0 (!%p240_p3), %v645_v3  ;;  %v657_v14 = vpack.c.bf16 (!%p240_p3), %v370_v10, %v369_v9  ;;  %v372_v16 = vld [vmem:[%s845_s2 + $0x48] sm:$0xff] (!%p240_p3)  ;;  %v373_v18 = vld [vmem:[%s845_s2 + $0x50] sm:$0xff] (!%p240_p3)  ;;  %v374_v21 = vld [vmem:[%s845_s2 + $0x58] sm:$0xff] (!%p240_p3) }
   0xa   : > { %648 = vmatpush3.bf16.msra.mxu0 (!%p240_p3), %v645_v3  ;;  %v661_v17 = vpack.c.bf16 (!%p240_p3), %v372_v16, %v371_v15  ;;  %v665_v24 = vpack.c.bf16 (!%p240_p3), %v374_v21, %v373_v18  ;;  %v597_v35 = vld [vmem:[%s846_s3] ss:$0 sm:$0xff] (!%p240_p3) }
   0xb   : > { %650 = vmatprep.subr.bf16.mxu0 (!%p240_p3), %v649_v5  ;;  %v598_v37 = vld [vmem:[%s847_s4] ss:$0 sm:$0xff] (!%p240_p3) }
   0xe   : > { %s854_s18 = smov (!%p294_p4, %s712_s18), 1  ;;  %652 = vmatpush3.bf16.msra.mxu0 %v649_v5 }
   0xf   : > { %s669_s9 = smul.u32 24, %s854_s18  ;;  %654 = vmatprep.subr.bf16.mxu0 %v653_v8  ;;  %s603_s14 = sshll.u32 %s854_s18, 4 }
  0x10   : > { %s327_s17 = scalar_lea.vmem %s848_s5, %s603_s14 }
  0x11   : > { %s301_s12 = scalar_lea.vmem %s843_s0, %s669_s9  ;;  %s602_s13 = sadd.s32 16, %s669_s9 }
  0x12   : > { %v329_v11 = vld [vmem:[%s301_s12] sm:$0xff]  ;;  %v330_v12 = vld [vmem:[%s301_s12 + $0x8] sm:$0xff]  ;;  %s316_s24 = scalar_lea.vmem %s844_s1, %s602_s13  ;;  %656 = vmatpush3.bf16.msra.mxu0 %v653_v8  ;;  %s723_s9 = smov 64  }
  0x13   : > { %332 = vst.msk [vmem:[#allocation2] sm:$0xff] %vm331_vm0, %v329_v11  ;;  %333 = vst.msk [vmem:[#allocation2 + $0x8] sm:$0xff] %vm331_vm0, %v330_v12  ;;  %v334_v13 = vld [vmem:[%s316_s24] sm:$0xff]  ;;  %658 = vmatprep.subr.bf16.mxu0 %v657_v14 }
  0x14   : > { %335 = vst.msk [vmem:[#allocation2 + $0x10] sm:$0xff] %vm331_vm0, %v334_v13 }
  0x16   : > { %660 = vmatpush3.bf16.msra.mxu0 %v657_v14 }
  0x17   : > { %662 = vmatprep.subr.bf16.mxu0 %v661_v17 }
  0x1a   : > { %v338_v19 = vld [vmem:[#allocation2 + $0x1] sm:$0xff]  ;;  %664 = vmatpush3.bf16.msra.mxu0 %v661_v17 }
  0x1b   : > { %v340_v20 = vld [vmem:[#allocation2 + $0x2] sm:$0xff]  ;;  %344 = vrot.lane.b32.xlu0 %v338_v19, %s722_s8  ;;  %v341_v23 = vld [vmem:[#allocation2 + $0xa] sm:$0xff]  ;;  %666 = vmatprep.subr.bf16.mxu0 %v665_v24 }
  0x1c   : > { %352 = vrot.lane.b32.xlu1 %v340_v20, %s723_s9  ;;  %v339_v22 = vld [vmem:[#allocation2 + $0x9] sm:$0xff]  ;;  %v336_v25 = vld [vmem:[#allocation2] sm:$0xff] }
  0x1d   : > { %v337_v30 = vld [vmem:[#allocation2 + $0x8] sm:$0xff] }
  0x1e   : > { %668 = vmatpush3.bf16.msra.mxu0 %v665_v24 }
  0x1f   : > { %346 = vrot.lane.b32.xlu0 %v339_v22, %s722_s8 }
  0x20   : > { %354 = vrot.lane.b32.xlu1 %v341_v23, %s723_s9 }
  0x8d   : > { %v345_v26 = vpop.permute.xlu0 %344 }
  0x8e   : > { %v353_v27 = vpop.permute.xlu1 %352  ;;  %v358_v28 = vsel %vm331_vm0, %v336_v25, %v345_v26 }
  0x8f   : > { %v361_v29 = vsel %vm360_vm1, %v358_v28, %v353_v27 }
  0x90   : > { %642 = vmatprep.mubr.msk.f32.mxu0 %vm375_vm2, %v361_v29 }
  0x91   : > { %v347_v31 = vpop.permute.xlu0 %346 }
  0x92   : > { %v355_v32 = vpop.permute.xlu1 %354  ;;  %v359_v33 = vsel %vm331_vm0, %v337_v30, %v347_v31 }
  0x93   : > { %v362_v34 = vsel %vm360_vm1, %v359_v33, %v355_v32 }
  0x94   : > { %643 = vmatmul.mubr.msk.f32.vlgmr.msra.gmra.mrb[0].mxu0 %vm375_vm2, %v362_v34 }
 0x167   : > { %v644_v36 = vpop.f32.mrb[0].mxu0 }
 0x168   : > { %v465_v38 = vmul.f32 %v644_v36, %v597_v35  ;;  %v448_v39 = vpop.f32.mrb[1].mxu0 }
 0x169   : > { %v464_v40 = vmul.f32 %v597_v35, %v448_v39 }
 0x16a   : > { %v474_v41 = vadd.f32 %v598_v37, %v465_v38 }
 0x16b   : > { %v473_v42 = vadd.f32 %v598_v37, %v464_v40 }
 0x16c   : > { %v476_v43 = vmul.f32 0.2, %v474_v41 }
 0x16d   : > { %v475_v44 = vmul.f32 0.2, %v473_v42 }
 0x16e   : > { %v478_v45 = vmax.f32 %v474_v41, %v476_v43 }
 0x16f   : > { %v477_v46 = vmax.f32 %v473_v42, %v475_v44 }
 0x170   : > { %480 = vst.msk [vmem:[%s327_s17 + $0x8] sm:$0xff] %vm331_vm0, %v478_v45 }
 0x171   : > { %479 = vst.msk [vmem:[%s327_s17] sm:$0xff] %vm331_vm0, %v477_v46 }
 0x172 PF: > { %s15_s20 = sadd.s32 1, %s720_s20   ;;  %s849_s18 = smov %s716_s19 }
 0x173   : > { %p12_p5 = scmp.ge.s32.totalorder %s15_s20, 4   ;;  %s850_s19 = smov %s852_s21 }
 0x175   :  { %14 = sbr.rel (!%p12_p5) target bundleno = 2 (0x2), region = 73 }

// kernel: forward.5
= control target key start
LH: loop header
LB: loop body
LE: loop exit
PB: predicated region body
PF: predicated region fallthrough
CT: control target
= control target key end

     0   :  { %s759_s18 = smov 0   ;;  %s761_s19 = smov 0   ;;  %s858_s0 = inlined_call_operand.vmem [shape: f32[2,40,16], index: 0, kind: input, shape index: {}, may-alias: {0,1}]   ;;  %s859_s1 = inlined_call_operand.vmem [shape: f32[2,40,16], index: 1, kind: input, shape index: {}, may-alias: {0,1}]   ;;  %s860_s2 = inlined_call_operand.vmem [shape: f32[1,48,16], index: 2, kind: input, shape index: {}]   ;;  %s861_s3 = inlined_call_operand.vmem [shape: f32[1,16], index: 3, kind: input, shape index: {}]   ;;  %s862_s4 = inlined_call_operand.vmem [shape: f32[1,16], index: 4, kind: input, shape index: {}]   ;;  %s863_s5 = inlined_call_operand.vmem [shape: f32[2,32,16], index: 5, kind: output, shape index: {}]  }
   0x1   :  { %s763_s20 = smov 0   ;;  %s765_s21 = smov 0  }
   0x2   :  { %s767_s22 = smov 0  }
   0x3 LB: > { %s24_s23 = sadd.s32 1, %s717_s20  ;;  %s27_s24 = sadd.s32 1, %s721_s21  ;;  %s725_s22 = sphi %s767_s22, %s15_s22   ;;  %s721_s21 = sphi %s765_s21, %s867_s21   ;;  %s717_s20 = sphi %s763_s20, %s866_s20   ;;  %s713_s19 = sphi %s761_s19, %s865_s19   ;;  %s709_s18 = sphi %s759_s18, %s864_s18  }
   0x4   : > { %p25_p0 = scmp.ge.s32.totalorder %s24_s23, 2  ;;  %p589_p1 = scmp.ge.s32.totalorder %s725_s22, 1 }
   0x5   : > { %p239_p2 = scmp.lt.s32.totalorder %s725_s22, 5 }
   0x6   : > { %s869_s23 = smov (%p25_p0, %s24_s23), 0  ;;  %s871_s24 = smov (!%p25_p0, %s27_s24), %s721_s21 }
   0x7   : > { %p240_p3 = pnand %p589_p1, %p239_p2  ;;  %p29_p4 = scmp.ge.s32.totalorder %s871_s24, 2 }
   0x8   : > { %s789_s25 = sshll.u32 (!%p240_p3), %s709_s18, 1  ;;  %p294_p5 = scmp.lt.s32.totalorder (!%p240_p3), %s713_s19, 1  ;;  %v363_v0 = vld [vmem:[%s860_s2] sm:$0xff] (!%p240_p3)  ;;  %v364_v1 = vld [vmem:[%s860_s2 + $0x8] sm:$0xff] (!%p240_p3)  ;;  %v365_v2 = vld [vmem:[%s860_s2 + $0x10] sm:$0xff] (!%p240_p3)  ;;  %vm331_vm0 = vcmask (!%p240_p3), 130048  }
   0x9   : > { %s873_s24 = smov (%p29_p4, %s871_s24), 0  ;;  %243 = sbr.rel (%p240_p3) target bundleno = 375 (0x177), region = 40 }
   0xa   : > { %p296_p6 = scmp.lt.s32.totalorder (!%p240_p3), %s789_s25, 4  ;;  %v632_v3 = vpack.c.bf16 (!%p240_p3), %v364_v1, %v363_v0  ;;  %v366_v4 = vld [vmem:[%s860_s2 + $0x18] sm:$0xff] (!%p240_p3)  ;;  %s608_s11 = sadd.s32 (!%p240_p3), 2, %s789_s25  ;;  %v367_v6 = vld [vmem:[%s860_s2 + $0x20] sm:$0xff] (!%p240_p3)  ;;  %v368_v7 = vld [vmem:[%s860_s2 + $0x28] sm:$0xff] (!%p240_p3)  ;;  %vm360_vm1 = vcmask (!%p240_p3), 261120  }
   0xb   : > { %v636_v5 = vpack.c.bf16 (!%p240_p3), %v366_v4, %v365_v2  ;;  %p311_p7 = scmp.lt.s32.totalorder (!%p240_p3), %s608_s11, 4  ;;  %v640_v8 = vpack.c.bf16 (!%p240_p3), %v368_v7, %v367_v6  ;;  %p322_p8 = scmp.lt.s32.totalorder (!%p240_p3), %s789_s25, 3  ;;  %vm369_vm2 = vcmask (!%p240_p3), 392192   ;;  %v599_v26 = vld [vmem:[%s861_s3] ss:$0 sm:$0xff] (!%p240_p3) }
   0xc   : > { %633 = vmatprep.subr.bf16.mxu0 (!%p240_p3), %v632_v3  ;;  %s727_s12 = smov (!%p240_p3), 16   ;;  %s728_s13 = smov (!%p240_p3), 32   ;;  %v600_v28 = vld [vmem:[%s862_s4] ss:$0 sm:$0xff] (!%p240_p3) }
   0xd   : > { %635 = vmatpush3.bf16.msra.mxu0 (!%p240_p3), %v632_v3 }
   0xe   : > { %637 = vmatprep.subr.bf16.mxu0 (!%p240_p3), %v636_v5 }
  0x10   : > { %s875_s19 = smov (!%p294_p5, %s713_s19), 1  ;;  %s877_s11 = smov (!%p311_p7, %s608_s11), 4 }
  0x11   : > { %s297_s9 = scalar_select %p296_p6, %s789_s25, 4  ;;  %639 = vmatpush3.bf16.msra.mxu0 %v636_v5 }
  0x12   : > { %s644_s10 = smul.u32 5, %s875_s19  ;;  %641 = vmatprep.subr.bf16.mxu0 %v640_v8  ;;  %s595_s8 = sshll.u32 %s875_s19, 2 }
  0x13   : > { %s879_s25 = smov (!%p322_p8, %s789_s25), 3 }
  0x14   : > { %s299_s16 = sadd.s32 %s644_s10, %s297_s9  ;;  %s314_s28 = sadd.s32 %s644_s10, %s877_s11 }
  0x15   : > { %s591_s17 = sshll.u32 %s299_s16, 3  ;;  %s593_s29 = sshll.u32 %s314_s28, 3  ;;  %643 = vmatpush3.bf16.msra.mxu0 %v640_v8 }
  0x16   : > { %s301_s27 = scalar_lea.vmem %s858_s0, %s591_s17  ;;  %s316_s7 = scalar_lea.vmem %s859_s1, %s593_s29 }
  0x17   : > { %v329_v9 = vld [vmem:[%s301_s27] sm:$0xff]  ;;  %v330_v10 = vld [vmem:[%s301_s27 + $0x8] sm:$0xff]  ;;  %s827_s9 = sadd.s32 %s595_s8, %s879_s25 }
  0x18   : > { %332 = vst.msk [vmem:[#allocation2] sm:$0xff] %vm331_vm0, %v329_v9  ;;  %333 = vst.msk [vmem:[#allocation2 + $0x8] sm:$0xff] %vm331_vm0, %v330_v10  ;;  %v334_v11 = vld [vmem:[%s316_s7] sm:$0xff]  ;;  %s596_s14 = sshll.u32 %s827_s9, 3 }
  0x19   : > { %335 = vst.msk [vmem:[#allocation2 + $0x10] sm:$0xff] %vm331_vm0, %v334_v11  ;;  %s327_s17 = scalar_lea.vmem %s863_s5, %s596_s14 }
  0x1f   : > { %v338_v12 = vld [vmem:[#allocation2 + $0x1] sm:$0xff] }
  0x20   : > { %v340_v13 = vld [vmem:[#allocation2 + $0x2] sm:$0xff]  ;;  %344 = vrot.lane.b32.xlu0 %v338_v12, %s727_s12  ;;  %v341_v15 = vld [vmem:[#allocation2 + $0xa] sm:$0xff] }
  0x21   : > { %352 = vrot.lane.b32.xlu1 %v340_v13, %s728_s13  ;;  %v339_v14 = vld [vmem:[#allocation2 + $0x9] sm:$0xff]  ;;  %v336_v16 = vld [vmem:[#allocation2] sm:$0xff] }
  0x22   : > { %v337_v21 = vld [vmem:[#allocation2 + $0x8] sm:$0xff] }
  0x24   : > { %346 = vrot.lane.b32.xlu0 %v339_v14, %s727_s12 }
  0x25   : > { %354 = vrot.lane.b32.xlu1 %v341_v15, %s728_s13 }
  0x92   : > { %v345_v17 = vpop.permute.xlu0 %344 }
  0x93   : > { %v353_v18 = vpop.permute.xlu1 %352  ;;  %v358_v19 = vsel %vm331_vm0, %v336_v16, %v345_v17 }
  0x94   : > { %v361_v20 = vsel %vm360_vm1, %v358_v19, %v353_v18 }
  0x95   : > { %629 = vmatprep.mubr.msk.f32.mxu0 %vm369_vm2, %v361_v20 }
  0x96   : > { %v347_v22 = vpop.permute.xlu0 %346 }
  0x97   : > { %v355_v23 = vpop.permute.xlu1 %354  ;;  %v359_v24 = vsel %vm331_vm0, %v337_v21, %v347_v22 }
  0x98   : > { %v362_v25 = vsel %vm360_vm1, %v359_v24, %v355_v23 }
  0x99   : > { %630 = vmatmul.mubr.msk.f32.vlgmr.msra.gmra.mrb[0].mxu0 %vm369_vm2, %v362_v25 }
 0x16c   : > { %v631_v27 = vpop.f32.mrb[0].mxu0 }
 0x16d   : > { %v459_v29 = vmul.f32 %v631_v27, %v599_v26  ;;  %v442_v30 = vpop.f32.mrb[1].mxu0 }
 0x16e   : > { %v458_v31 = vmul.f32 %v599_v26, %v442_v30 }
 0x16f   : > { %v468_v32 = vadd.f32 %v600_v28, %v459_v29 }
 0x170   : > { %v467_v33 = vadd.f32 %v600_v28, %v458_v31 }
 0x171   : > { %v470_v34 = vmul.f32 0.2, %v468_v32 }
 0x172   : > { %v469_v35 = vmul.f32 0.2, %v467_v33 }
 0x173   : > { %v472_v36 = vmax.f32 %v468_v32, %v470_v34 }
 0x174   : > { %v471_v37 = vmax.f32 %v467_v33, %v469_v35 }
 0x175   : > { %474 = vst.msk [vmem:[%s327_s17 + $0x8] sm:$0xff] %vm331_vm0, %v472_v36 }
 0x176   : > { %473 = vst.msk [vmem:[%s327_s17] sm:$0xff] %vm331_vm0, %v471_v37 }
 0x177 PF: > { %s15_s22 = sadd.s32 1, %s725_s22   ;;  %s864_s18 = smov %s717_s20 }
 0x178   : > { %p12_p9 = scmp.ge.s32.totalorder %s15_s22, 6   ;;  %s865_s19 = smov %s721_s21 }
 0x179   : > { %s866_s20 = smov %s869_s23  ;;  %s867_s21 = smov %s873_s24 }
 0x17a   :  { %14 = sbr.rel (!%p12_p9) target bundleno = 3 (0x3), region = 73 }

// kernel: forward.4
= control target key start
LH: loop header
LB: loop body
LE: loop exit
PB: predicated region body
PF: predicated region fallthrough
CT: control target
= control target key end

     0   :  { %s804_s18 = smov 0   ;;  %s806_s19 = smov 0   ;;  %s893_s0 = inlined_call_operand.vmem [shape: f32[2,72,2], index: 0, kind: input, shape index: {}, may-alias: {0,1}]   ;;  %s894_s1 = inlined_call_operand.vmem [shape: f32[2,72,2], index: 1, kind: input, shape index: {}, may-alias: {0,1}]   ;;  %s895_s2 = inlined_call_operand.vmem [shape: f32[1,14,8], index: 2, kind: input, shape index: {}]   ;;  %s896_s3 = inlined_call_operand.vmem [shape: f32[1,8], index: 3, kind: input, shape index: {}]   ;;  %s897_s4 = inlined_call_operand.vmem [shape: f32[1,8], index: 4, kind: input, shape index: {}]   ;;  %s898_s5 = inlined_call_operand.vmem [shape: f32[2,64,8], index: 5, kind: output, shape index: {}]  }
   0x1   :  { %s808_s20 = smov 0   ;;  %s810_s21 = smov 0  }
   0x2   :  { %s812_s22 = smov 0  }
   0x3 LB: > { %s24_s23 = sadd.s32 1, %s757_s20  ;;  %s27_s24 = sadd.s32 1, %s761_s21  ;;  %s765_s22 = sphi %s812_s22, %s15_s22   ;;  %s761_s21 = sphi %s810_s21, %s902_s21   ;;  %s757_s20 = sphi %s808_s20, %s901_s20   ;;  %s753_s19 = sphi %s806_s19, %s900_s19   ;;  %s749_s18 = sphi %s804_s18, %s899_s18  }
   0x4   : > { %p25_p0 = scmp.ge.s32.totalorder %s24_s23, 4  ;;  %p641_p1 = scmp.ge.s32.totalorder %s765_s22, 1 }
   0x5   : > { %p239_p2 = scmp.lt.s32.totalorder %s765_s22, 9 }
   0x6   : > { %s904_s23 = smov (%p25_p0, %s24_s23), 0  ;;  %s906_s24 = smov (!%p25_p0, %s27_s24), %s761_s21 }
   0x7   : > { %p240_p3 = pnand %p641_p1, %p239_p2  ;;  %p29_p4 = scmp.ge.s32.totalorder %s906_s24, 2 }
   0x8   : > { %s834_s25 = sshll.u32 (!%p240_p3), %s749_s18, 1  ;;  %p294_p5 = scmp.lt.s32.totalorder (!%p240_p3), %s753_s19, 1  ;;  %vm331_vm0 = vcmask (!%p240_p3), 15360   ;;  %v415_v5 = vld [vmem:[%s895_s2] sm:$0xff] (!%p240_p3)  ;;  %v416_v6 = vld [vmem:[%s895_s2 + $0x8] sm:$0x3f] (!%p240_p3) }
   0x9   : > { %s908_s24 = smov (%p29_p4, %s906_s24), 0  ;;  %243 = sbr.rel (%p240_p3) target bundleno = 392 (0x188), region = 40 }
   0xa   : > { %p296_p6 = scmp.lt.s32.totalorder (!%p240_p3), %s834_s25, 8  ;;  %s661_s28 = sadd.s32 (!%p240_p3), 2, %s834_s25  ;;  %vm424_vm1 = vcmask (!%p240_p3), 1045504   ;;  %v673_v9 = vpack.c.bf16 (!%p240_p3), %v416_v6, %v415_v5  ;;  %vm769_vm2 = vmmov (!%p240_p3), 1   ;;  %vm400_vm4 = vcmask (!%p240_p3), 31744  }
   0xb   : > { %p311_p7 = scmp.lt.s32.totalorder (!%p240_p3), %s661_s28, 8  ;;  %s767_s14 = smov (!%p240_p3), 4   ;;  %vm674_vm3 = vmpackc.low (!%p240_p3), %vm424_vm1, %vm769_vm2  ;;  %vm403_vm5 = vcmask (!%p240_p3), 48128   ;;  %vm406_vm6 = vcmask (!%p240_p3), 64512   ;;  %vm409_vm7 = vcmask (!%p240_p3), 80896   ;;  %vm412_vm8 = vcmask (!%p240_p3), 97280  }
   0xc   : > { %s768_s15 = smov (!%p240_p3), 2   ;;  %675 = vmatprep.subr.msk.bf16.mxu0 (!%p240_p3), %vm674_vm3, %v673_v9  ;;  %p322_p8 = scmp.lt.s32.totalorder (!%p240_p3), %s834_s25, 7  ;;  %vm417_vm9 = vcmask (!%p240_p3), 113664   ;;  %v652_v44 = vld [vmem:[%s896_s3] ss:$0 sm:$0xff] (!%p240_p3) }
   0xd   : > { %678 = vmatpush3.bf16.msk.msra.mxu0 (!%p240_p3), %vm674_vm3, %v673_v9  ;;  %s772_s6 = smov (!%p240_p3), 10   ;;  %s773_s7 = smov (!%p240_p3), 12   ;;  %v653_v46 = vld [vmem:[%s897_s4] ss:$0 sm:$0xff] (!%p240_p3) }
  0x10   : > { %s910_s19 = smov (!%p294_p5, %s753_s19), 1  ;;  %s912_s28 = smov (!%p311_p7, %s661_s28), 8 }
  0x11   : > { %s297_s26 = scalar_select %p296_p6, %s834_s25, 8 }
  0x12   : > { %s679_s27 = smul.u32 9, %s910_s19  ;;  %s914_s25 = smov (!%p322_p8, %s834_s25), 7 }
  0x14   : > { %s299_s29 = sadd.s32 %s679_s27, %s297_s26  ;;  %s314_s9 = sadd.s32 %s679_s27, %s912_s28 }
  0x15   : > { %s643_s30 = sshll.u32 %s299_s29, 3  ;;  %s645_s10 = sshll.u32 %s314_s9, 3 }
  0x16   : > { %s301_s8 = scalar_lea.vmem %s893_s0, %s643_s30  ;;  %s316_s13 = scalar_lea.vmem %s894_s1, %s645_s10 }
  0x17   : > { %v329_v0 = vld [vmem:[%s301_s8] sm:$0xff]  ;;  %v330_v1 = vld [vmem:[%s301_s8 + $0x8] sm:$0xff]  ;;  %s770_s27 = smov 6   ;;  %s647_s28 = sshll.u32 %s910_s19, 3 }
  0x18   : > { %332 = vst.msk [vmem:[#allocation2] sm:$0xff] %vm331_vm0, %v329_v0  ;;  %333 = vst.msk [vmem:[#allocation2 + $0x8] sm:$0xff] %vm331_vm0, %v330_v1  ;;  %v334_v2 = vld [vmem:[%s316_s13] sm:$0xff]  ;;  %s771_s29 = smov 8   ;;  %s860_s30 = sadd.s32 %s647_s28, %s914_s25 }
  0x19   : > { %335 = vst.msk [vmem:[#allocation2 + $0x10] sm:$0xff] %vm331_vm0, %v334_v2  ;;  %s648_s10 = sshll.u32 %s860_s30, 3 }
  0x1a   : > { %s327_s13 = scalar_lea.vmem %s898_s5, %s648_s10 }
  0x1f   : > { %v340_v3 = vld [vmem:[#allocation2 + $0x2] sm:$0xff] }
  0x20   : > { %v338_v4 = vld [vmem:[#allocation2 + $0x1] sm:$0xff]  ;;  %360 = vrot.lane.b32.xlu1 %v340_v3, %s767_s14  ;;  %v341_v7 = vld [vmem:[#allocation2 + $0xa] sm:$0xff] }
  0x21   : > { %352 = vrot.lane.b32.xlu0 %v338_v4, %s768_s15  ;;  %v339_v8 = vld [vmem:[#allocation2 + $0x9] sm:$0xff]  ;;  %v336_v24 = vld [vmem:[#allocation2] sm:$0xff] }
  0x22   : > { %v343_v10 = vld [vmem:[#allocation2 + $0xb] sm:$0xff]  ;;  %v342_v11 = vld [vmem:[#allocation2 + $0x3] sm:$0xff] }
  0x23   : > { %v345_v12 = vld [vmem:[#allocation2 + $0xc] sm:$0xff]  ;;  %v344_v13 = vld [vmem:[#allocation2 + $0x4] sm:$0xff] }
  0x24   : > { %362 = vrot.lane.b32.xlu1 %v341_v7, %s767_s14  ;;  %v347_v14 = vld [vmem:[#allocation2 + $0xd] sm:$0xff]  ;;  %v346_v15 = vld [vmem:[#allocation2 + $0x5] sm:$0xff] }
  0x25   : > { %354 = vrot.lane.b32.xlu0 %v339_v8, %s768_s15  ;;  %v349_v16 = vld [vmem:[#allocation2 + $0xe] sm:$0xff]  ;;  %v348_v17 = vld [vmem:[#allocation2 + $0x6] sm:$0xff] }
  0x26   : > { %v337_v25 = vld [vmem:[#allocation2 + $0x8] sm:$0xff] }
  0x28   : > { %370 = vrot.lane.b32.xlu1 %v343_v10, %s770_s27 }
  0x29   : > { %368 = vrot.lane.b32.xlu0 %v342_v11, %s770_s27 }
  0x2c   : > { %378 = vrot.lane.b32.xlu1 %v345_v12, %s771_s29 }
  0x2d   : > { %376 = vrot.lane.b32.xlu0 %v344_v13, %s771_s29 }
  0x30   : > { %386 = vrot.lane.b32.xlu1 %v347_v14, %s772_s6 }
  0x31   : > { %384 = vrot.lane.b32.xlu0 %v346_v15, %s772_s6 }
  0x34   : > { %394 = vrot.lane.b32.xlu1 %v349_v16, %s773_s7 }
  0x35   : > { %392 = vrot.lane.b32.xlu0 %v348_v17, %s773_s7 }
  0x92   : > { %v361_v18 = vpop.permute.xlu1 %360 }
  0x93   : > { %v353_v19 = vpop.permute.xlu0 %352 }
  0x94   : > { %v398_v28 = vsel %vm331_vm0, %v336_v24, %v353_v19 }
  0x95   : > { %v401_v33 = vsel %vm400_vm4, %v398_v28, %v361_v18 }
  0x96   : > { %v363_v20 = vpop.permute.xlu1 %362 }
  0x97   : > { %v355_v21 = vpop.permute.xlu0 %354 }
  0x98   : > { %v399_v29 = vsel %vm331_vm0, %v337_v25, %v355_v21 }
  0x99   : > { %v402_v32 = vsel %vm400_vm4, %v399_v29, %v363_v20 }
  0x9a   : > { %v371_v22 = vpop.permute.xlu1 %370 }
  0x9b   : > { %v369_v23 = vpop.permute.xlu0 %368  ;;  %v405_v34 = vsel %vm403_vm5, %v402_v32, %v371_v22 }
  0x9c   : > { %v404_v35 = vsel %vm403_vm5, %v401_v33, %v369_v23 }
  0x9e   : > { %v379_v26 = vpop.permute.xlu1 %378 }
  0x9f   : > { %v377_v27 = vpop.permute.xlu0 %376  ;;  %v408_v36 = vsel %vm406_vm6, %v405_v34, %v379_v26 }
  0xa0   : > { %v407_v37 = vsel %vm406_vm6, %v404_v35, %v377_v27 }
  0xa2   : > { %v387_v30 = vpop.permute.xlu1 %386 }
  0xa3   : > { %v385_v31 = vpop.permute.xlu0 %384  ;;  %v411_v38 = vsel %vm409_vm7, %v408_v36, %v387_v30 }
  0xa4   : > { %v410_v39 = vsel %vm409_vm7, %v407_v37, %v385_v31 }
  0xa6   : > { %v395_v40 = vpop.permute.xlu1 %394 }
  0xa7   : > { %v393_v41 = vpop.permute.xlu0 %392  ;;  %v414_v42 = vsel %vm412_vm8, %v411_v38, %v395_v40 }
  0xa8   : > { %v413_v43 = vsel %vm412_vm8, %v410_v39, %v393_v41 }
  0xa9   : > { %670 = vmatprep.mubr.msk.f32.mxu0 %vm417_vm9, %v413_v43 }
  0xaa   : > { %671 = vmatmul.mubr.msk.f32.vlgmr.msra.gmra.mrb[0].mxu0 %vm417_vm9, %v414_v42 }
 0x17d   : > { %v672_v45 = vpop.f32.mrb[0].mxu0 }
 0x17e   : > { %v511_v47 = vmul.f32 %v672_v45, %v652_v44  ;;  %v494_v48 = vpop.f32.mrb[1].mxu0 }
 0x17f   : > { %v510_v49 = vmul.f32 %v652_v44, %v494_v48 }
 0x180   : > { %v520_v50 = vadd.f32 %v653_v46, %v511_v47 }
 0x181   : > { %v519_v51 = vadd.f32 %v653_v46, %v510_v49 }
 0x182   : > { %v522_v52 = vmul.f32 0.2, %v520_v50 }
 0x183   : > { %v521_v53 = vmul.f32 0.2, %v519_v51 }
 0x184   : > { %v524_v54 = vmax.f32 %v520_v50, %v522_v52 }
 0x185   : > { %v523_v55 = vmax.f32 %v519_v51, %v521_v53 }
 0x186   : > { %526 = vst.msk [vmem:[%s327_s13 + $0x8] sm:$0xff] %vm406_vm6, %v524_v54 }
 0x187   : > { %525 = vst.msk [vmem:[%s327_s13] sm:$0xff] %vm406_vm6, %v523_v55 }
 0x188 PF: > { %s15_s22 = sadd.s32 1, %s765_s22   ;;  %s899_s18 = smov %s757_s20 }
 0x189   : > { %p12_p9 = scmp.ge.s32.totalorder %s15_s22, 10   ;;  %s900_s19 = smov %s761_s21 }
 0x18a   : > { %s901_s20 = smov %s904_s23  ;;  %s902_s21 = smov %s908_s24 }
 0x18b   :  { %14 = sbr.rel (!%p12_p9) target bundleno = 3 (0x3), region = 73 }

// kernel: forward.7
= control target key start
LH: loop header
LB: loop body
LE: loop exit
PB: predicated region body
PF: predicated region fallthrough
CT: control target
= control target key end

     0   :  { %s1019_s18 = smov 0   ;;  %s1021_s19 = smov 0   ;;  %s1165_s0 = inlined_call_operand.vmem [shape: f32[2,24,32], index: 0, kind: input, shape index: {}, may-alias: {0,1}]   ;;  %s1166_s1 = inlined_call_operand.vmem [shape: f32[2,24,32], index: 1, kind: input, shape index: {}, may-alias: {0,1}]   ;;  %s1167_s2 = inlined_call_operand.vmem [shape: f32[2,80,4], index: 2, kind: input, shape index: {}]   ;;  %s1168_s3 = inlined_call_operand.vmem [shape: f32[1,8], index: 3, kind: input, shape index: {}]   ;;  %s1169_s4 = inlined_call_operand.vmem [shape: f32[1,8], index: 4, kind: input, shape index: {}]   ;;  %s1170_s5 = inlined_call_operand.vmem [shape: f32[2,16,8], index: 5, kind: output, shape index: {}]  }
   0x1   :  { %s1023_s20 = smov 0  }
   0x2 LB: > { %s27_s21 = sadd.s32 1, %s976_s19  ;;  %p786_p0 = scmp.ge.s32.totalorder %s980_s20, 1  ;;  %s980_s20 = sphi %s1023_s20, %s15_s20   ;;  %s976_s19 = sphi %s1021_s19, %s1172_s19   ;;  %s972_s18 = sphi %s1019_s18, %s1171_s18  }
   0x3   : > { %p29_p1 = scmp.ge.s32.totalorder %s27_s21, 2  ;;  %p239_p2 = scmp.lt.s32.totalorder %s980_s20, 3 }
   0x5   : > { %s1174_s21 = smov (%p29_p1, %s27_s21), 0  ;;  %p240_p3 = pnand %p786_p0, %p239_p2 }
   0x6   : > { %p294_p4 = scmp.lt.s32.totalorder (!%p240_p3), %s972_s18, 1  ;;  %v795_v0 = vld [vmem:[%s1167_s2 + $0x50] sm:$0xff] (!%p240_p3)  ;;  %v796_v1 = vld [vmem:[%s1167_s2 + $0x58] sm:$0xff] (!%p240_p3)  ;;  %v797_v2 = vld [vmem:[%s1167_s2 + $0x60] sm:$0xff] (!%p240_p3)  ;;  %vm331_vm0 = vcmask (!%p240_p3), 261120   ;;  %s982_s29 = smov (!%p240_p3), 16  }
   0x7   : > { %243 = sbr.rel (%p240_p3) target bundleno = 490 (0x1ea), region = 40  ;;  %v904_v3 = vpack.c.bf16 (!%p240_p3), %v796_v1, %v795_v0  ;;  %v798_v4 = vld [vmem:[%s1167_s2 + $0x68] sm:$0xff] (!%p240_p3)  ;;  %v799_v6 = vld [vmem:[%s1167_s2 + $0x70] sm:$0xff] (!%p240_p3)  ;;  %v800_v7 = vld [vmem:[%s1167_s2 + $0x78] sm:$0xff] (!%p240_p3)  ;;  %s983_s30 = smov (!%p240_p3), 112   ;;  %vm378_vm1 = vcmask (!%p240_p3), 130048  }
   0x8   : > { %v908_v5 = vpack.c.bf16 (!%p240_p3), %v798_v4, %v797_v2  ;;  %v912_v8 = vpack.c.bf16 (!%p240_p3), %v800_v7, %v799_v6  ;;  %v801_v9 = vld [vmem:[%s1167_s2 + $0x80] sm:$0xff] (!%p240_p3)  ;;  %v802_v10 = vld [vmem:[%s1167_s2 + $0x88] sm:$0xff] (!%p240_p3)  ;;  %v803_v15 = vld [vmem:[%s1167_s2 + $0x90] sm:$0xff] (!%p240_p3)  ;;  %s984_s22 = smov (!%p240_p3), 32   ;;  %s985_s27 = smov (!%p240_p3), 48   ;;  %vm383_vm2 = vcmask (!%p240_p3), 392192  }
   0x9   : > { %905 = vmatprep.subr.bf16.mxu1 (!%p240_p3), %v904_v3  ;;  %v916_v14 = vpack.c.bf16 (!%p240_p3), %v802_v10, %v801_v9  ;;  %v804_v16 = vld [vmem:[%s1167_s2 + $0x98] sm:$0xff] (!%p240_p3)  ;;  %v389_v22 = vld [vmem:[%s1167_s2] sm:$0xff] (!%p240_p3)  ;;  %v390_v23 = vld [vmem:[%s1167_s2 + $0x8] sm:$0xff] (!%p240_p3)  ;;  %s986_s8 = smov (!%p240_p3), 64   ;;  %vm386_vm3 = vcmask (!%p240_p3), 523264   ;;  %vm399_vm4 = vcmask (!%p240_p3), 654336  }
   0xa   : > { %907 = vmatpush3.bf16.msra.mxu1 (!%p240_p3), %v904_v3  ;;  %v920_v17 = vpack.c.bf16 (!%p240_p3), %v804_v16, %v803_v15  ;;  %v884_v24 = vpack.c.bf16 (!%p240_p3), %v390_v23, %v389_v22  ;;  %v391_v25 = vld [vmem:[%s1167_s2 + $0x10] sm:$0xff] (!%p240_p3)  ;;  %v392_v26 = vld [vmem:[%s1167_s2 + $0x18] sm:$0xff] (!%p240_p3)  ;;  %v393_v28 = vld [vmem:[%s1167_s2 + $0x20] sm:$0xff] (!%p240_p3)  ;;  %vm499_vm5 = vcmask (!%p240_p3), 31744   ;;  %vm674_vm6 = vcmask (!%p240_p3), 64544  }
   0xb   : > { %909 = vmatprep.subr.bf16.mxu1 (!%p240_p3), %v908_v5  ;;  %v888_v27 = vpack.c.bf16 (!%p240_p3), %v392_v26, %v391_v25  ;;  %v394_v29 = vld [vmem:[%s1167_s2 + $0x28] sm:$0xff] (!%p240_p3)  ;;  %v395_v33 = vld [vmem:[%s1167_s2 + $0x30] sm:$0xff] (!%p240_p3)  ;;  %v396_v34 = vld [vmem:[%s1167_s2 + $0x38] sm:$0xff] (!%p240_p3) }
   0xc   : > { %885 = vmatprep.subr.bf16.mxu0 (!%p240_p3), %v884_v24  ;;  %v892_v32 = vpack.c.bf16 (!%p240_p3), %v394_v29, %v393_v28  ;;  %v896_v37 = vpack.c.bf16 (!%p240_p3), %v396_v34, %v395_v33  ;;  %v397_v38 = vld [vmem:[%s1167_s2 + $0x40] sm:$0xff] (!%p240_p3)  ;;  %v398_v39 = vld [vmem:[%s1167_s2 + $0x48] sm:$0xff] (!%p240_p3) }
   0xd   : > { %887 = vmatpush3.bf16.msra.mxu0 (!%p240_p3), %v884_v24  ;;  %v900_v42 = vpack.c.bf16 (!%p240_p3), %v398_v39, %v397_v38  ;;  %v807_v43 = vld [vmem:[%s1168_s3] ss:$0 sm:$0xff] (!%p240_p3) }
   0xe   : > { %s1176_s18 = smov (!%p294_p4, %s972_s18), 1  ;;  %911 = vmatpush3.bf16.msra.mxu1 %v908_v5  ;;  %889 = vmatprep.subr.bf16.mxu0 %v888_v27  ;;  %v1125_v44 = vld [vmem:[%s1169_s4] ss:$0 sm:$0xff] }
   0xf   : > { %s924_s9 = smul.u32 24, %s1176_s18  ;;  %913 = vmatprep.subr.bf16.mxu1 %v912_v8  ;;  %s813_s14 = sshll.u32 %s1176_s18, 4 }
  0x10   : > { %s327_s17 = scalar_lea.vmem %s1170_s5, %s813_s14 }
  0x11   : > { %s301_s12 = scalar_lea.vmem %s1165_s0, %s924_s9  ;;  %s812_s13 = sadd.s32 16, %s924_s9  ;;  %891 = vmatpush3.bf16.msra.mxu0 %v888_v27 }
  0x12   : > { %v329_v11 = vld [vmem:[%s301_s12] sm:$0xff]  ;;  %v330_v12 = vld [vmem:[%s301_s12 + $0x8] sm:$0xff]  ;;  %s316_s24 = scalar_lea.vmem %s1166_s1, %s812_s13  ;;  %915 = vmatpush3.bf16.msra.mxu1 %v912_v8  ;;  %893 = vmatprep.subr.bf16.mxu0 %v892_v32  ;;  %s988_s13 = smov 4  }
  0x13   : > { %332 = vst.msk [vmem:[#allocation2] sm:$0xff] %vm331_vm0, %v329_v11  ;;  %333 = vst.msk [vmem:[#allocation2 + $0x8] sm:$0xff] %vm331_vm0, %v330_v12  ;;  %v334_v13 = vld [vmem:[%s316_s24] sm:$0xff]  ;;  %917 = vmatprep.subr.bf16.mxu1 %v916_v14 }
  0x14   : > { %335 = vst.msk [vmem:[#allocation2 + $0x10] sm:$0xff] %vm331_vm0, %v334_v13 }
  0x15   : > { %895 = vmatpush3.bf16.msra.mxu0 %v892_v32 }
  0x16   : > { %919 = vmatpush3.bf16.msra.mxu1 %v916_v14  ;;  %897 = vmatprep.subr.bf16.mxu0 %v896_v37 }
  0x17   : > { %921 = vmatprep.subr.bf16.mxu1 %v920_v17 }
  0x19   : > { %899 = vmatpush3.bf16.msra.mxu0 %v896_v37 }
  0x1a   : > { %v506_v18 = vld [vmem:[#allocation2 + $0x2] sm:$0xff]  ;;  %923 = vmatpush3.bf16.msra.mxu1 %v920_v17  ;;  %901 = vmatprep.subr.bf16.mxu0 %v900_v42 }
  0x1b   : > { %v1079_v19 = vld [vmem:[#allocation2] sm:$0xff]  ;;  %522 = vrot.lane.b32.xlu1 %v506_v18, %s982_s29  ;;  %v507_v20 = vld [vmem:[#allocation2 + $0xa] sm:$0xff] }
  0x1c   : > { %514 = vrot.lane.b32.xlu0 %v1079_v19, %s983_s30  ;;  %v1083_v21 = vld [vmem:[#allocation2 + $0x8] sm:$0xff] }
  0x1d   : > { %v509_v30 = vld [vmem:[#allocation2 + $0xb] sm:$0xff]  ;;  %v508_v31 = vld [vmem:[#allocation2 + $0x3] sm:$0xff]  ;;  %903 = vmatpush3.bf16.msra.mxu0 %v900_v42 }
  0x1e   : > { %v511_v35 = vld [vmem:[#allocation2 + $0xc] sm:$0xff]  ;;  %v510_v36 = vld [vmem:[#allocation2 + $0x4] sm:$0xff] }
  0x1f   : > { %524 = vrot.lane.b32.xlu1 %v507_v20, %s982_s29  ;;  %v338_v40 = vld [vmem:[#allocation2 + $0x1] sm:$0xff]  ;;  %v339_v41 = vld [vmem:[#allocation2 + $0x9] sm:$0xff] }
  0x20   : > { %516 = vrot.lane.b32.xlu0 %v1083_v21, %s983_s30 }
  0x23   : > { %532 = vrot.lane.b32.xlu1 %v509_v30, %s984_s22 }
  0x24   : > { %530 = vrot.lane.b32.xlu0 %v508_v31, %s984_s22 }
  0x27   : > { %540 = vrot.lane.b32.xlu1 %v511_v35, %s985_s27 }
  0x28   : > { %538 = vrot.lane.b32.xlu0 %v510_v36, %s985_s27 }
  0x2b   : > { %350 = vrot.lane.b32.xlu1 %v339_v41, %s982_s29 }
  0x2c   : > { %348 = vrot.lane.b32.xlu0 %v338_v40, %s982_s29  ;;  %s987_s29 = smov 124  }
  0x2f   : > { %358 = vrot.lane.b32.xlu1 %v507_v20, %s984_s22 }
  0x30   : > { %356 = vrot.lane.b32.xlu0 %v506_v18, %s984_s22 }
  0x33   : > { %366 = vrot.lane.b32.xlu1 %v509_v30, %s985_s27 }
  0x34   : > { %364 = vrot.lane.b32.xlu0 %v508_v31, %s985_s27 }
  0x37   : > { %374 = vrot.lane.b32.xlu1 %v511_v35, %s986_s8 }
  0x38   : > { %372 = vrot.lane.b32.xlu0 %v510_v36, %s986_s8 }
  0x3b   : > { %661 = vrot.lane.b32.xlu1 %v1125_v44, %s987_s29 }
  0x3c   : > { %650 = vrot.lane.b32.xlu0 %v807_v43, %s987_s29 }
  0x8d   : > { %v523_v45 = vpop.permute.xlu1 %522 }
  0x8e   : > { %v515_v46 = vpop.permute.xlu0 %514 }
  0x8f   : > { %v544_v49 = vsel %vm378_vm1, %v515_v46, %v338_v40 }
  0x90   : > { %v546_v54 = vsel %vm331_vm0, %v544_v49, %v523_v45 }
  0x91   : > { %v525_v47 = vpop.permute.xlu1 %524 }
  0x92   : > { %v517_v48 = vpop.permute.xlu0 %516 }
  0x93   : > { %v545_v50 = vsel %vm378_vm1, %v517_v48, %v339_v41 }
  0x94   : > { %v547_v53 = vsel %vm331_vm0, %v545_v50, %v525_v47 }
  0x95   : > { %v533_v51 = vpop.permute.xlu1 %532 }
  0x96   : > { %v531_v52 = vpop.permute.xlu0 %530  ;;  %v549_v55 = vsel %vm383_vm2, %v547_v53, %v533_v51 }
  0x97   : > { %v548_v56 = vsel %vm383_vm2, %v546_v54, %v531_v52 }
  0x99   : > { %v541_v57 = vpop.permute.xlu1 %540 }
  0x9a   : > { %v539_v58 = vpop.permute.xlu0 %538  ;;  %v551_v59 = vsel %vm386_vm3, %v549_v55, %v541_v57 }
  0x9b   : > { %v550_v60 = vsel %vm386_vm3, %v548_v56, %v539_v58 }
  0x9c   : > { %881 = vmatprep.mubr.msk.f32.mxu1 %vm399_vm4, %v550_v60 }
  0x9d   : > { %882 = vmatmul.mubr.msk.f32.vlgmr.msra.gmra.mrb[0].mxu1 %vm399_vm4, %v551_v59  ;;  %v351_v62 = vpop.permute.xlu1 %350 }
  0x9e   : > { %v349_v61 = vpop.permute.xlu0 %348  ;;  %v380_v0 = vsel %vm378_vm1, %v1083_v21, %v351_v62 }
  0x9f   : > { %v379_v63 = vsel %vm378_vm1, %v1079_v19, %v349_v61 }
  0xa1   : > { %v359_v2 = vpop.permute.xlu1 %358 }
  0xa2   : > { %v357_v1 = vpop.permute.xlu0 %356  ;;  %v382_v4 = vsel %vm331_vm0, %v380_v0, %v359_v2 }
  0xa3   : > { %v381_v3 = vsel %vm331_vm0, %v379_v63, %v357_v1 }
  0xa5   : > { %v367_v6 = vpop.permute.xlu1 %366 }
  0xa6   : > { %v365_v5 = vpop.permute.xlu0 %364  ;;  %v385_v8 = vsel %vm383_vm2, %v382_v4, %v367_v6 }
  0xa7   : > { %v384_v7 = vsel %vm383_vm2, %v381_v3, %v365_v5 }
  0xa9   : > { %v375_v10 = vpop.permute.xlu1 %374 }
  0xaa   : > { %v373_v9 = vpop.permute.xlu0 %372  ;;  %v388_v11 = vsel %vm386_vm3, %v385_v8, %v375_v10 }
  0xab   : > { %v387_v12 = vsel %vm386_vm3, %v384_v7, %v373_v9 }
  0xac   : > { %858 = vmatprep.mubr.msk.f32.mxu0 %vm399_vm4, %v387_v12 }
  0xad   : > { %859 = vmatmul.mubr.msk.f32.vlgmr.msra.gmra.mrb[0].mxu0 %vm399_vm4, %v388_v11  ;;  %v662_v15 = vpop.permute.xlu1 %661 }
  0xae   : > { %v651_v13 = vpop.permute.xlu0 %650 }
 0x170   : > { %v883_v14 = vpop.f32.mrb[0].mxu1 }
 0x171   : > { %v654_v16 = vmul.f32 %v883_v14, %v651_v13  ;;  %v635_v17 = vpop.f32.mrb[1].mxu1 }
 0x172   : > { %v653_v18 = vmul.f32 %v651_v13, %v635_v17 }
 0x173   : > { %v665_v19 = vadd.f32 %v662_v15, %v654_v16 }
 0x174   : > { %v664_v20 = vadd.f32 %v662_v15, %v653_v18 }
 0x175   : > { %670 = vrot.lane.b32.xlu1 %v665_v19, %s988_s13 }
 0x176   : > { %668 = vrot.lane.b32.xlu0 %v664_v20, %s988_s13 }
 0x180   : > { %v860_v21 = vpop.f32.mrb[0].mxu0 }
 0x181   : > { %v489_v22 = vmul.f32 %v860_v21, %v807_v43  ;;  %v472_v23 = vpop.f32.mrb[1].mxu0 }
 0x182   : > { %v488_v24 = vmul.f32 %v807_v43, %v472_v23 }
 0x183   : > { %v498_v25 = vadd.f32 %v1125_v44, %v489_v22 }
 0x184   : > { %v497_v26 = vadd.f32 %v1125_v44, %v488_v24 }
 0x185   : > { %501 = vst.msk [vmem:[%s327_s17 + $0x8] sm:$0xff] %vm499_vm5, %v498_v25 }
 0x186   : > { %500 = vst.msk [vmem:[%s327_s17] sm:$0xff] %vm499_vm5, %v497_v26 }
 0x1e7   : > { %v671_v27 = vpop.permute.xlu1 %670 }
 0x1e8   : > { %676 = vst.msk [vmem:[%s327_s17 + $0x8] sm:$0xff] %vm674_vm6, %v671_v27  ;;  %v669_v28 = vpop.permute.xlu0 %668 }
 0x1e9   : > { %675 = vst.msk [vmem:[%s327_s17] sm:$0xff] %vm674_vm6, %v669_v28 }
 0x1ea PF: > { %s15_s20 = sadd.s32 1, %s980_s20   ;;  %s1171_s18 = smov %s976_s19 }
 0x1eb   : > { %p12_p5 = scmp.ge.s32.totalorder %s15_s20, 4   ;;  %s1172_s19 = smov %s1174_s21 }
 0x1ed   :  { %14 = sbr.rel (!%p12_p5) target bundleno = 2 (0x2), region = 74 }

</bundles_post_ra>
